<compile_context>
chip_gen: v7x
topology: tpu7x:2x2x1
jax: 0.10.0
libtpu: 0.0.40
codegen_flags: <defaults>
</compile_context>

<pallas_src>
import jax
import jax.numpy as jnp
from jax import lax
from jax.experimental import pallas as pl
from jax.experimental.pallas import tpu as pltpu


def _bottleneck_kernel(x_ref, xt_ref, xb_ref,
                       w1_ref, s1_ref, b1_ref,
                       w2_ref, s2_ref, b2_ref,
                       w3_ref, s3_ref, b3_ref,
                       out_ref):
    # x_ref:  (1, TH, W, Cin)   current row band, Cin = 4P
    # xt_ref: (1, 1,  W, Cin)   row just above the band (clamped at image edge)
    # xb_ref: (1, 1,  W, Cin)   row just below the band (clamped at image edge)
    # w1_ref: (Cin, P)          1x1 conv
    # w2_ref: (3, 3P, P)        3x3 conv, kx folded into the contraction dim
    # w3_ref: (P, 4P)           1x1 conv
    # s*/b*:  (1, C) f32        folded BN scale / bias
    # out_ref:(1, TH, W, 4P)
    r = pl.program_id(1)
    nrows = pl.num_programs(1)
    TH, W, Cin = x_ref.shape[1], x_ref.shape[2], x_ref.shape[3]
    P = w1_ref.shape[1]
    cdt = w1_ref.dtype                      # compute dtype for MXU operands (bf16 or f32)

    w1 = w1_ref[...]
    s1 = s1_ref[...]
    b1 = b1_ref[...]

    x_cur = x_ref[0]                        # (TH, W, Cin) f32

    # ---- conv1 (1x1) + bn1 + relu, for the band and the two halo rows ----
    def conv1_bn_relu(v2d):                 # v2d: (M, Cin) f32
        y = jnp.dot(v2d.astype(cdt), w1, preferred_element_type=jnp.float32)
        return jnp.maximum(y * s1 + b1, 0.0)

    t1_cur = conv1_bn_relu(x_cur.reshape(TH * W, Cin)).reshape(TH, W, P)
    t1_top = conv1_bn_relu(xt_ref[0].reshape(W, Cin)).reshape(1, W, P)
    t1_bot = conv1_bn_relu(xb_ref[0].reshape(W, Cin)).reshape(1, W, P)
    # Halo rows outside the image correspond to conv2's zero padding -> zero them.
    t1_top = jnp.where(r > 0, t1_top, 0.0)
    t1_bot = jnp.where(r < nrows - 1, t1_bot, 0.0)

    # (TH+2, W, P) extended activation, rounded to the MXU compute dtype.
    t1_ext = jnp.concatenate([t1_top, t1_cur, t1_bot], axis=0).astype(cdt)

    # ---- conv2 (3x3, stride 1, pad 1) + bn2 + relu ----
    # Fold the kx taps into K: column w of `big` holds [t1[.., w-1], t1[.., w], t1[.., w+1]].
    zcol = jnp.zeros((TH + 2, 1, P), cdt)
    x_l = jnp.concatenate([zcol, t1_ext[:, :W - 1, :]], axis=1)     # col w -> t1[.., w-1]
    x_r = jnp.concatenate([t1_ext[:, 1:, :], zcol], axis=1)         # col w -> t1[.., w+1]
    big = jnp.concatenate([x_l, t1_ext, x_r], axis=-1)              # (TH+2, W, 3P)

    acc = jnp.zeros((TH * W, P), jnp.float32)
    for ky in range(3):                                             # 3 dots, K = 3P
        acc = acc + jnp.dot(big[ky:ky + TH].reshape(TH * W, 3 * P), w2_ref[ky],
                            preferred_element_type=jnp.float32)
    t2 = jnp.maximum(acc * s2_ref[...] + b2_ref[...], 0.0)          # (TH*W, P)

    # ---- conv3 (1x1) + bn3 + identity residual + relu ----
    t3 = jnp.dot(t2.astype(cdt), w3_ref[...], preferred_element_type=jnp.float32)
    t3 = t3 * s3_ref[...] + b3_ref[...]
    out = jnp.maximum(t3 + x_cur.reshape(TH * W, Cin), 0.0)

    out_ref[0] = out.reshape(TH, W, 4 * P).astype(out_ref.dtype)    # lane-dense 4P store


def _default_row_tile(H, W, Cin, P, budget_bytes=4 << 20):
    """Largest divisor of H whose per-step footprint stays under ~4 MiB
    (sized so double-buffered IO + intermediates fit v7x's 64 MiB VMEM with headroom)."""
    best = 1
    for th in range(1, H + 1):
        if H % th:
            continue
        io_bytes = 2 * (th * W * Cin + th * W * 4 * P) * 4          # x + out blocks (dbl-buffered)
        mid_bytes = (th + 2) * W * (4 * P + 2 * 6 * P) + th * W * 4 * (P + 4 * P)
        if io_bytes + mid_bytes <= budget_bytes:
            best = th
    return best


def bottleneck_pallas(x_nchw, params, *, row_tile=None, compute_dtype=jnp.bfloat16):
    """x_nchw: (N, Cin, H, W) float32; params: dict of kernel-layout weights (see make_params)."""
    N, Cin, H, W = x_nchw.shape
    P = params["w1"].shape[1]
    Cout = 4 * P
    assert Cin == Cout, "identity residual requires inplanes == planes * 4 (stride=1, no downsample)"

    if row_tile is None:
        row_tile = _default_row_tile(H, W, Cin, P)
    assert H % row_tile == 0, "row_tile must divide H"
    TH = row_tile
    R = H // TH

    x_nhwc = jnp.transpose(x_nchw, (0, 2, 3, 1)).astype(jnp.float32)   # NHWC inside the kernel

    w1 = params["w1"].astype(compute_dtype)          # (Cin, P)
    w2 = params["w2"].astype(compute_dtype)          # (3, 3P, P)
    w3 = params["w3"].astype(compute_dtype)          # (P, 4P)
    s1 = params["s1"].astype(jnp.float32); b1 = params["b1"].astype(jnp.float32)
    s2 = params["s2"].astype(jnp.float32); b2 = params["b2"].astype(jnp.float32)
    s3 = params["s3"].astype(jnp.float32); b3 = params["b3"].astype(jnp.float32)

    def full(shape):
        return pl.BlockSpec(shape, lambda n, r: (0,) * len(shape))

    grid_spec = pltpu.PrefetchScalarGridSpec(
        num_scalar_prefetch=0,
        grid=(N, R),
        in_specs=[
            # current row band
            pl.BlockSpec((1, TH, W, Cin), lambda n, r: (n, r, 0, 0)),
            # 1-row halos (block size 1 along H => block index == row index), clamped at edges
            pl.BlockSpec((1, 1, W, Cin),
                         lambda n, r: (n, jnp.maximum(r * TH - 1, 0), 0, 0)),
            pl.BlockSpec((1, 1, W, Cin),
                         lambda n, r: (n, jnp.minimum(r * TH + TH, H - 1), 0, 0)),
            full(w1.shape), full(s1.shape), full(b1.shape),
            full(w2.shape), full(s2.shape), full(b2.shape),
            full(w3.shape), full(s3.shape), full(b3.shape),
        ],
        out_specs=pl.BlockSpec((1, TH, W, Cout), lambda n, r: (n, r, 0, 0)),
    )

    out_nhwc = pl.pallas_call(
        _bottleneck_kernel,
        out_shape=jax.ShapeDtypeStruct((N, H, W, Cout), jnp.float32),
        grid_spec=grid_spec,
        compiler_params=pltpu.CompilerParams(
            dimension_semantics=("parallel", "parallel"),
            vmem_limit_bytes=48 * 1024 * 1024,      # headroom for v7x (64 MiB physical VMEM)
        ),
    )(x_nhwc, x_nhwc, x_nhwc, w1, s1, b1, w2, s2, b2, w3, s3, b3)

    return jnp.transpose(out_nhwc, (0, 3, 1, 2))    # back to NCHW


# -------------------- plain-JAX reference (for verification) --------------------
def _bn_ref(x, gamma, beta, mean, var, eps=1e-5):
    inv = gamma / jnp.sqrt(var + eps)
    return x * inv[None, :, None, None] + (beta - mean * inv)[None, :, None, None]


def bottleneck_ref(x, raw, compute_dtype=jnp.float32):
    """Reference Bottleneck.  compute_dtype mimics the kernel's MXU operand precision."""
    def conv(v, w, pad=0):
        return lax.conv_general_dilated(
            v.astype(compute_dtype), w.astype(compute_dtype),
            window_strides=(1, 1), padding=[(pad, pad), (pad, pad)],
            dimension_numbers=("NCHW", "OIHW", "NCHW"),
            preferred_element_type=jnp.float32)

    out = jnp.maximum(_bn_ref(conv(x, raw["conv1_w"]), *raw["bn1"]), 0.0)
    out = jnp.maximum(_bn_ref(conv(out, raw["conv2_w"], pad=1), *raw["bn2"]), 0.0)
    out = _bn_ref(conv(out, raw["conv3_w"]), *raw["bn3"])
    return jnp.maximum(out + x, 0.0)


def make_params(key, inplanes, planes):
    eps = 1e-5
    exp = 4
    keys = jax.random.split(key, 4)
    conv1_w = jax.random.normal(keys[0], (planes, inplanes, 1, 1), jnp.float32) * 0.1
    conv2_w = jax.random.normal(keys[1], (planes, planes, 3, 3), jnp.float32) * 0.1
    conv3_w = jax.random.normal(keys[2], (planes * exp, planes, 1, 1), jnp.float32) * 0.1

    def bn(c, off):
        gamma = 1.0 + 0.01 * jnp.arange(c, dtype=jnp.float32)
        beta = 0.02 * jnp.arange(c, dtype=jnp.float32) - 0.05
        mean = 0.01 * jnp.arange(c, dtype=jnp.float32) + off
        var = 1.0 + 0.05 * jnp.arange(c, dtype=jnp.float32)
        return (gamma, beta, mean, var)

    raw = {
        "conv1_w": conv1_w, "conv2_w": conv2_w, "conv3_w": conv3_w,
        "bn1": bn(planes, 0.01), "bn2": bn(planes, 0.02), "bn3": bn(planes * exp, 0.03),
    }

    def fold(bn_p):
        gamma, beta, mean, var = bn_p
        s = gamma / jnp.sqrt(var + eps)
        b = beta - mean * s
        return s.reshape(1, -1), b.reshape(1, -1)

    s1, b1 = fold(raw["bn1"])
    s2, b2 = fold(raw["bn2"])
    s3, b3 = fold(raw["bn3"])

    # conv2: OIHW -> (ky, kx, cin, cout) -> fold kx into K: (3, 3P, P)
    w2_hwio = jnp.transpose(conv2_w, (2, 3, 1, 0))
    w2k = w2_hwio.reshape(3, 3 * planes, planes)

    kernel_params = {
        "w1": jnp.transpose(conv1_w[:, :, 0, 0], (1, 0)),   # (Cin, P)
        "w2": w2k,                                          # (3, 3P, P)
        "w3": jnp.transpose(conv3_w[:, :, 0, 0], (1, 0)),   # (P, 4P)
        "s1": s1, "b1": b1, "s2": s2, "b2": b2, "s3": s3, "b3": b3,
    }
    return raw, kernel_params


if __name__ == "__main__":
    key = jax.random.PRNGKey(0)
    planes = 4
    inplanes = planes * 4          # identity residual (downsample=None, stride=1)
    N, H, W = 2, 16, 16

    kx_, kp_ = jax.random.split(key)
    x = jax.random.normal(kx_, (N, inplanes, H, W), jnp.float32)   # NCHW like PyTorch

    raw, kernel_params = make_params(kp_, inplanes, planes)

    # 1) f32 MXU operands, 2 row-tiles per image -> tight check vs. the exact f32 reference.
    out_f32 = jax.block_until_ready(
        bottleneck_pallas(x, kernel_params, row_tile=8, compute_dtype=jnp.float32))
    ref_f32 = bottleneck_ref(x, raw, compute_dtype=jnp.float32)
    assert out_f32.shape == ref_f32.shape == (N, planes * 4, H, W)
    err = float(jnp.max(jnp.abs(out_f32 - ref_f32)))
    assert jnp.allclose(out_f32, ref_f32, rtol=5e-4, atol=5e-4), err

    # 2) bf16 MXU operands (production path), 4 row-tiles -> check vs. a bf16-aware reference.
    out_bf16 = jax.block_until_ready(
        bottleneck_pallas(x, kernel_params, row_tile=4, compute_dtype=jnp.bfloat16))
    ref_bf16 = bottleneck_ref(x, raw, compute_dtype=jnp.bfloat16)
    err = float(jnp.max(jnp.abs(out_bf16 - ref_bf16)))
    assert jnp.allclose(out_bf16, ref_bf16, rtol=1e-2, atol=1e-2), err

    print("KERNEL_OK")
</pallas_src>

<mosaic_0001>
module attributes {stable_mosaic.version = 11 : i64} {
  func.func @_bottleneck_kernel(%arg0: i32, %arg1: i32, %arg2: memref<1x8x16x16xf32, #tpu.memory_space<vmem>>, %arg3: memref<1x1x16x16xf32, #tpu.memory_space<vmem>>, %arg4: memref<1x1x16x16xf32, #tpu.memory_space<vmem>>, %arg5: memref<16x4xf32, #tpu.memory_space<vmem>>, %arg6: memref<1x4xf32, #tpu.memory_space<vmem>>, %arg7: memref<1x4xf32, #tpu.memory_space<vmem>>, %arg8: memref<3x12x4xf32, #tpu.memory_space<vmem>>, %arg9: memref<1x4xf32, #tpu.memory_space<vmem>>, %arg10: memref<1x4xf32, #tpu.memory_space<vmem>>, %arg11: memref<4x16xf32, #tpu.memory_space<vmem>>, %arg12: memref<1x16xf32, #tpu.memory_space<vmem>>, %arg13: memref<1x16xf32, #tpu.memory_space<vmem>>, %arg14: memref<1x8x16x16xf32, #tpu.memory_space<vmem>>) attributes {dimension_semantics = [#tpu.dimension_semantics<parallel>, #tpu.dimension_semantics<parallel>], iteration_bounds = array<i64: 2, 2>, scalar_prefetch = 0 : i64, scratch_operands = 0 : i64, tpu.core_type = #tpu.core_type<tc>, window_params = [{transform_indices = @transform_0, window_bounds = array<i64: 1, 8, 16, 16>}, {transform_indices = @transform_1, window_bounds = array<i64: 1, 1, 16, 16>}, {transform_indices = @transform_2, window_bounds = array<i64: 1, 1, 16, 16>}, {pipeline_mode = #tpu.pipeline_mode<synchronous>, transform_indices = @transform_3, window_bounds = array<i64: 16, 4>}, {pipeline_mode = #tpu.pipeline_mode<synchronous>, transform_indices = @transform_4, window_bounds = array<i64: 1, 4>}, {pipeline_mode = #tpu.pipeline_mode<synchronous>, transform_indices = @transform_5, window_bounds = array<i64: 1, 4>}, {pipeline_mode = #tpu.pipeline_mode<synchronous>, transform_indices = @transform_6, window_bounds = array<i64: 3, 12, 4>}, {pipeline_mode = #tpu.pipeline_mode<synchronous>, transform_indices = @transform_7, window_bounds = array<i64: 1, 4>}, {pipeline_mode = #tpu.pipeline_mode<synchronous>, transform_indices = @transform_8, window_bounds = array<i64: 1, 4>}, {pipeline_mode = #tpu.pipeline_mode<synchronous>, transform_indices = @transform_9, window_bounds = array<i64: 4, 16>}, {pipeline_mode = #tpu.pipeline_mode<synchronous>, transform_indices = @transform_10, window_bounds = array<i64: 1, 16>}, {pipeline_mode = #tpu.pipeline_mode<synchronous>, transform_indices = @transform_11, window_bounds = array<i64: 1, 16>}, {transform_indices = @transform_12, window_bounds = array<i64: 1, 8, 16, 16>}]} {
    %c0 = arith.constant 0 : index
    %c0_0 = arith.constant 0 : index
    %0 = vector.load %arg5[%c0, %c0_0] : memref<16x4xf32, #tpu.memory_space<vmem>>, vector<16x4xf32>
    %c0_1 = arith.constant 0 : index
    %c0_2 = arith.constant 0 : index
    %1 = vector.load %arg6[%c0_1, %c0_2] : memref<1x4xf32, #tpu.memory_space<vmem>>, vector<1x4xf32>
    %c0_3 = arith.constant 0 : index
    %c0_4 = arith.constant 0 : index
    %2 = vector.load %arg7[%c0_3, %c0_4] : memref<1x4xf32, #tpu.memory_space<vmem>>, vector<1x4xf32>
    %c0_5 = arith.constant 0 : index
    %c0_6 = arith.constant 0 : index
    %c0_7 = arith.constant 0 : index
    %c0_8 = arith.constant 0 : index
    %3 = vector.load %arg2[%c0_5, %c0_6, %c0_7, %c0_8] : memref<1x8x16x16xf32, #tpu.memory_space<vmem>>, vector<1x8x16x16xf32>
    %4 = vector.shape_cast %3 : vector<1x8x16x16xf32> to vector<8x16x16xf32>
    %5 = vector.shape_cast %4 : vector<8x16x16xf32> to vector<128x16xf32>
    %cst = arith.constant dense<0.000000e+00> : vector<128x4xf32>
    %6 = tpu.matmul %5, %0, %cst {dimension_numbers = #tpu.dot_dimension_numbers<[1], [0], [0], [1], [0, 0, 1, 1], [], []>} : vector<128x16xf32>, vector<16x4xf32>, vector<128x4xf32> -> vector<128x4xf32>
    %7 = vector.broadcast %1 : vector<1x4xf32> to vector<128x4xf32>
    %8 = arith.mulf %6, %7 : vector<128x4xf32>
    %9 = vector.broadcast %2 : vector<1x4xf32> to vector<128x4xf32>
    %10 = arith.addf %8, %9 : vector<128x4xf32>
    %cst_9 = arith.constant 0.000000e+00 : f32
    %11 = vector.broadcast %cst_9 : f32 to vector<128x4xf32>
    %12 = arith.maximumf %10, %11 : vector<128x4xf32>
    %13 = vector.shape_cast %12 : vector<128x4xf32> to vector<8x16x4xf32>
    %c0_10 = arith.constant 0 : index
    %c0_11 = arith.constant 0 : index
    %c0_12 = arith.constant 0 : index
    %c0_13 = arith.constant 0 : index
    %14 = vector.load %arg3[%c0_10, %c0_11, %c0_12, %c0_13] : memref<1x1x16x16xf32, #tpu.memory_space<vmem>>, vector<1x1x16x16xf32>
    %15 = vector.shape_cast %14 : vector<1x1x16x16xf32> to vector<1x16x16xf32>
    %16 = vector.shape_cast %15 : vector<1x16x16xf32> to vector<16x16xf32>
    %cst_14 = arith.constant dense<0.000000e+00> : vector<16x4xf32>
    %17 = tpu.matmul %16, %0, %cst_14 {dimension_numbers = #tpu.dot_dimension_numbers<[1], [0], [0], [1], [0, 0, 1, 1], [], []>} : vector<16x16xf32>, vector<16x4xf32>, vector<16x4xf32> -> vector<16x4xf32>
    %18 = vector.broadcast %1 : vector<1x4xf32> to vector<16x4xf32>
    %19 = arith.mulf %17, %18 : vector<16x4xf32>
    %20 = vector.broadcast %2 : vector<1x4xf32> to vector<16x4xf32>
    %21 = arith.addf %19, %20 : vector<16x4xf32>
    %cst_15 = arith.constant 0.000000e+00 : f32
    %22 = vector.broadcast %cst_15 : f32 to vector<16x4xf32>
    %23 = arith.maximumf %21, %22 : vector<16x4xf32>
    %24 = vector.shape_cast %23 : vector<16x4xf32> to vector<1x16x4xf32>
    %c0_16 = arith.constant 0 : index
    %c0_17 = arith.constant 0 : index
    %c0_18 = arith.constant 0 : index
    %c0_19 = arith.constant 0 : index
    %25 = vector.load %arg4[%c0_16, %c0_17, %c0_18, %c0_19] : memref<1x1x16x16xf32, #tpu.memory_space<vmem>>, vector<1x1x16x16xf32>
    %26 = vector.shape_cast %25 : vector<1x1x16x16xf32> to vector<1x16x16xf32>
    %27 = vector.shape_cast %26 : vector<1x16x16xf32> to vector<16x16xf32>
    %cst_20 = arith.constant dense<0.000000e+00> : vector<16x4xf32>
    %28 = tpu.matmul %27, %0, %cst_20 {dimension_numbers = #tpu.dot_dimension_numbers<[1], [0], [0], [1], [0, 0, 1, 1], [], []>} : vector<16x16xf32>, vector<16x4xf32>, vector<16x4xf32> -> vector<16x4xf32>
    %29 = vector.broadcast %1 : vector<1x4xf32> to vector<16x4xf32>
    %30 = arith.mulf %28, %29 : vector<16x4xf32>
    %31 = vector.broadcast %2 : vector<1x4xf32> to vector<16x4xf32>
    %32 = arith.addf %30, %31 : vector<16x4xf32>
    %cst_21 = arith.constant 0.000000e+00 : f32
    %33 = vector.broadcast %cst_21 : f32 to vector<16x4xf32>
    %34 = arith.maximumf %32, %33 : vector<16x4xf32>
    %35 = vector.shape_cast %34 : vector<16x4xf32> to vector<1x16x4xf32>
    %c0_i32 = arith.constant 0 : i32
    %36 = arith.cmpi sgt, %arg1, %c0_i32 : i32
    %cst_22 = arith.constant 0.000000e+00 : f32
    %37 = vector.broadcast %cst_22 : f32 to vector<1x16x4xf32>
    %38 = arith.select %36, %24, %37 : vector<1x16x4xf32>
    %c1_i32 = arith.constant 1 : i32
    %39 = arith.cmpi slt, %arg1, %c1_i32 : i32
    %cst_23 = arith.constant 0.000000e+00 : f32
    %40 = vector.broadcast %cst_23 : f32 to vector<1x16x4xf32>
    %41 = arith.select %39, %35, %40 : vector<1x16x4xf32>
    %42 = tpu.concatenate %38, %13, %41 in 0 : vector<1x16x4xf32>, vector<8x16x4xf32>, vector<1x16x4xf32> -> vector<10x16x4xf32>
    %cst_24 = arith.constant 0.000000e+00 : f32
    %43 = vector.broadcast %cst_24 : f32 to vector<10x1x4xf32>
    %44 = vector.extract_strided_slice %42 {offsets = [0, 0, 0], sizes = [10, 15, 4], strides = [1, 1, 1]} : vector<10x16x4xf32> to vector<10x15x4xf32>
    %45 = tpu.concatenate %43, %44 in 1 : vector<10x1x4xf32>, vector<10x15x4xf32> -> vector<10x16x4xf32>
    %46 = vector.extract_strided_slice %42 {offsets = [0, 1, 0], sizes = [10, 15, 4], strides = [1, 1, 1]} : vector<10x16x4xf32> to vector<10x15x4xf32>
    %47 = tpu.concatenate %46, %43 in 1 : vector<10x15x4xf32>, vector<10x1x4xf32> -> vector<10x16x4xf32>
    %48 = tpu.concatenate %45, %42, %47 in 2 : vector<10x16x4xf32>, vector<10x16x4xf32>, vector<10x16x4xf32> -> vector<10x16x12xf32>
    %cst_25 = arith.constant 0.000000e+00 : f32
    %49 = vector.broadcast %cst_25 : f32 to vector<128x4xf32>
    %50 = vector.extract_strided_slice %48 {offsets = [0, 0, 0], sizes = [8, 16, 12], strides = [1, 1, 1]} : vector<10x16x12xf32> to vector<8x16x12xf32>
    %51 = vector.shape_cast %50 : vector<8x16x12xf32> to vector<128x12xf32>
    %c0_26 = arith.constant 0 : index
    %c0_27 = arith.constant 0 : index
    %c0_28 = arith.constant 0 : index
    %52 = vector.load %arg8[%c0_26, %c0_27, %c0_28] : memref<3x12x4xf32, #tpu.memory_space<vmem>>, vector<1x12x4xf32>
    %53 = vector.shape_cast %52 : vector<1x12x4xf32> to vector<12x4xf32>
    %cst_29 = arith.constant dense<0.000000e+00> : vector<128x4xf32>
    %54 = tpu.matmul %51, %53, %cst_29 {dimension_numbers = #tpu.dot_dimension_numbers<[1], [0], [0], [1], [0, 0, 1, 1], [], []>} : vector<128x12xf32>, vector<12x4xf32>, vector<128x4xf32> -> vector<128x4xf32>
    %55 = arith.addf %49, %54 : vector<128x4xf32>
    %56 = vector.extract_strided_slice %48 {offsets = [1, 0, 0], sizes = [8, 16, 12], strides = [1, 1, 1]} : vector<10x16x12xf32> to vector<8x16x12xf32>
    %57 = vector.shape_cast %56 : vector<8x16x12xf32> to vector<128x12xf32>
    %c1 = arith.constant 1 : index
    %c0_30 = arith.constant 0 : index
    %c0_31 = arith.constant 0 : index
    %58 = vector.load %arg8[%c1, %c0_30, %c0_31] : memref<3x12x4xf32, #tpu.memory_space<vmem>>, vector<1x12x4xf32>
    %59 = vector.shape_cast %58 : vector<1x12x4xf32> to vector<12x4xf32>
    %cst_32 = arith.constant dense<0.000000e+00> : vector<128x4xf32>
    %60 = tpu.matmul %57, %59, %cst_32 {dimension_numbers = #tpu.dot_dimension_numbers<[1], [0], [0], [1], [0, 0, 1, 1], [], []>} : vector<128x12xf32>, vector<12x4xf32>, vector<128x4xf32> -> vector<128x4xf32>
    %61 = arith.addf %55, %60 : vector<128x4xf32>
    %62 = vector.extract_strided_slice %48 {offsets = [2, 0, 0], sizes = [8, 16, 12], strides = [1, 1, 1]} : vector<10x16x12xf32> to vector<8x16x12xf32>
    %63 = vector.shape_cast %62 : vector<8x16x12xf32> to vector<128x12xf32>
    %c2 = arith.constant 2 : index
    %c0_33 = arith.constant 0 : index
    %c0_34 = arith.constant 0 : index
    %64 = vector.load %arg8[%c2, %c0_33, %c0_34] : memref<3x12x4xf32, #tpu.memory_space<vmem>>, vector<1x12x4xf32>
    %65 = vector.shape_cast %64 : vector<1x12x4xf32> to vector<12x4xf32>
    %cst_35 = arith.constant dense<0.000000e+00> : vector<128x4xf32>
    %66 = tpu.matmul %63, %65, %cst_35 {dimension_numbers = #tpu.dot_dimension_numbers<[1], [0], [0], [1], [0, 0, 1, 1], [], []>} : vector<128x12xf32>, vector<12x4xf32>, vector<128x4xf32> -> vector<128x4xf32>
    %67 = arith.addf %61, %66 : vector<128x4xf32>
    %c0_36 = arith.constant 0 : index
    %c0_37 = arith.constant 0 : index
    %68 = vector.load %arg9[%c0_36, %c0_37] : memref<1x4xf32, #tpu.memory_space<vmem>>, vector<1x4xf32>
    %69 = vector.broadcast %68 : vector<1x4xf32> to vector<128x4xf32>
    %70 = arith.mulf %67, %69 : vector<128x4xf32>
    %c0_38 = arith.constant 0 : index
    %c0_39 = arith.constant 0 : index
    %71 = vector.load %arg10[%c0_38, %c0_39] : memref<1x4xf32, #tpu.memory_space<vmem>>, vector<1x4xf32>
    %72 = vector.broadcast %71 : vector<1x4xf32> to vector<128x4xf32>
    %73 = arith.addf %70, %72 : vector<128x4xf32>
    %cst_40 = arith.constant 0.000000e+00 : f32
    %74 = vector.broadcast %cst_40 : f32 to vector<128x4xf32>
    %75 = arith.maximumf %73, %74 : vector<128x4xf32>
    %c0_41 = arith.constant 0 : index
    %c0_42 = arith.constant 0 : index
    %76 = vector.load %arg11[%c0_41, %c0_42] : memref<4x16xf32, #tpu.memory_space<vmem>>, vector<4x16xf32>
    %cst_43 = arith.constant dense<0.000000e+00> : vector<128x16xf32>
    %77 = tpu.matmul %75, %76, %cst_43 {dimension_numbers = #tpu.dot_dimension_numbers<[1], [0], [0], [1], [0, 0, 1, 1], [], []>} : vector<128x4xf32>, vector<4x16xf32>, vector<128x16xf32> -> vector<128x16xf32>
    %c0_44 = arith.constant 0 : index
    %c0_45 = arith.constant 0 : index
    %78 = vector.load %arg12[%c0_44, %c0_45] : memref<1x16xf32, #tpu.memory_space<vmem>>, vector<1x16xf32>
    %79 = vector.broadcast %78 : vector<1x16xf32> to vector<128x16xf32>
    %80 = arith.mulf %77, %79 : vector<128x16xf32>
    %c0_46 = arith.constant 0 : index
    %c0_47 = arith.constant 0 : index
    %81 = vector.load %arg13[%c0_46, %c0_47] : memref<1x16xf32, #tpu.memory_space<vmem>>, vector<1x16xf32>
    %82 = vector.broadcast %81 : vector<1x16xf32> to vector<128x16xf32>
    %83 = arith.addf %80, %82 : vector<128x16xf32>
    %84 = vector.shape_cast %4 : vector<8x16x16xf32> to vector<128x16xf32>
    %85 = arith.addf %83, %84 : vector<128x16xf32>
    %cst_48 = arith.constant 0.000000e+00 : f32
    %86 = vector.broadcast %cst_48 : f32 to vector<128x16xf32>
    %87 = arith.maximumf %85, %86 : vector<128x16xf32>
    %88 = vector.shape_cast %87 : vector<128x16xf32> to vector<8x16x16xf32>
    %c0_49 = arith.constant 0 : index
    %c0_50 = arith.constant 0 : index
    %c0_51 = arith.constant 0 : index
    %c0_52 = arith.constant 0 : index
    %89 = vector.load %arg14[%c0_49, %c0_50, %c0_51, %c0_52] : memref<1x8x16x16xf32, #tpu.memory_space<vmem>>, vector<1x8x16x16xf32>
    %90 = vector.shape_cast %89 : vector<1x8x16x16xf32> to vector<8x16x16xf32>
    %91 = vector.shape_cast %88 : vector<8x16x16xf32> to vector<1x8x16x16xf32>
    tpu.vector_store %arg14[%c0_49, %c0_50, %c0_51, %c0_52], %91 {strides = array<i32>} : memref<1x8x16x16xf32, #tpu.memory_space<vmem>>, vector<1x8x16x16xf32>,
    return
  }
  func.func @transform_0(%arg0: i32, %arg1: i32) -> (i32, i32, i32, i32) {
    %c0_i32 = arith.constant 0 : i32
    %c0_i32_0 = arith.constant 0 : i32
    %c0_i32_1 = arith.constant 0 : i32
    return %arg0, %arg1, %c0_i32, %c0_i32_0 : i32, i32, i32, i32
  }
  func.func @transform_1(%arg0: i32, %arg1: i32) -> (i32, i32, i32, i32) {
    %c8_i32 = arith.constant 8 : i32
    %0 = arith.muli %arg1, %c8_i32 : i32
    %c1_i32 = arith.constant 1 : i32
    %1 = arith.subi %0, %c1_i32 : i32
    %c0_i32 = arith.constant 0 : i32
    %2 = arith.maxsi %1, %c0_i32 : i32
    %c0_i32_0 = arith.constant 0 : i32
    %c0_i32_1 = arith.constant 0 : i32
    %c0_i32_2 = arith.constant 0 : i32
    return %arg0, %2, %c0_i32_0, %c0_i32_1 : i32, i32, i32, i32
  }
  func.func @transform_2(%arg0: i32, %arg1: i32) -> (i32, i32, i32, i32) {
    %c8_i32 = arith.constant 8 : i32
    %0 = arith.muli %arg1, %c8_i32 : i32
    %c8_i32_0 = arith.constant 8 : i32
    %1 = arith.addi %0, %c8_i32_0 : i32
    %c15_i32 = arith.constant 15 : i32
    %2 = arith.minsi %1, %c15_i32 : i32
    %c0_i32 = arith.constant 0 : i32
    %c0_i32_1 = arith.constant 0 : i32
    %c0_i32_2 = arith.constant 0 : i32
    return %arg0, %2, %c0_i32, %c0_i32_1 : i32, i32, i32, i32
  }
  func.func @transform_3(%arg0: i32, %arg1: i32) -> (i32, i32) {
    %c0_i32 = arith.constant 0 : i32
    %c0_i32_0 = arith.constant 0 : i32
    %c0_i32_1 = arith.constant 0 : i32
    return %c0_i32, %c0_i32_0 : i32, i32
  }
  func.func @transform_4(%arg0: i32, %arg1: i32) -> (i32, i32) {
    %c0_i32 = arith.constant 0 : i32
    %c0_i32_0 = arith.constant 0 : i32
    %c0_i32_1 = arith.constant 0 : i32
    return %c0_i32, %c0_i32_0 : i32, i32
  }
  func.func @transform_5(%arg0: i32, %arg1: i32) -> (i32, i32) {
    %c0_i32 = arith.constant 0 : i32
    %c0_i32_0 = arith.constant 0 : i32
    %c0_i32_1 = arith.constant 0 : i32
    return %c0_i32, %c0_i32_0 : i32, i32
  }
  func.func @transform_6(%arg0: i32, %arg1: i32) -> (i32, i32, i32) {
    %c0_i32 = arith.constant 0 : i32
    %c0_i32_0 = arith.constant 0 : i32
    %c0_i32_1 = arith.constant 0 : i32
    %c0_i32_2 = arith.constant 0 : i32
    return %c0_i32, %c0_i32_0, %c0_i32_1 : i32, i32, i32
  }
  func.func @transform_7(%arg0: i32, %arg1: i32) -> (i32, i32) {
    %c0_i32 = arith.constant 0 : i32
    %c0_i32_0 = arith.constant 0 : i32
    %c0_i32_1 = arith.constant 0 : i32
    return %c0_i32, %c0_i32_0 : i32, i32
  }
  func.func @transform_8(%arg0: i32, %arg1: i32) -> (i32, i32) {
    %c0_i32 = arith.constant 0 : i32
    %c0_i32_0 = arith.constant 0 : i32
    %c0_i32_1 = arith.constant 0 : i32
    return %c0_i32, %c0_i32_0 : i32, i32
  }
  func.func @transform_9(%arg0: i32, %arg1: i32) -> (i32, i32) {
    %c0_i32 = arith.constant 0 : i32
    %c0_i32_0 = arith.constant 0 : i32
    %c0_i32_1 = arith.constant 0 : i32
    return %c0_i32, %c0_i32_0 : i32, i32
  }
  func.func @transform_10(%arg0: i32, %arg1: i32) -> (i32, i32) {
    %c0_i32 = arith.constant 0 : i32
    %c0_i32_0 = arith.constant 0 : i32
    %c0_i32_1 = arith.constant 0 : i32
    return %c0_i32, %c0_i32_0 : i32, i32
  }
  func.func @transform_11(%arg0: i32, %arg1: i32) -> (i32, i32) {
    %c0_i32 = arith.constant 0 : i32
    %c0_i32_0 = arith.constant 0 : i32
    %c0_i32_1 = arith.constant 0 : i32
    return %c0_i32, %c0_i32_0 : i32, i32
  }
  func.func @transform_12(%arg0: i32, %arg1: i32) -> (i32, i32, i32, i32) {
    %c0_i32 = arith.constant 0 : i32
    %c0_i32_0 = arith.constant 0 : i32
    %c0_i32_1 = arith.constant 0 : i32
    return %arg0, %arg1, %c0_i32, %c0_i32_0 : i32, i32, i32, i32
  }
}

</mosaic_0001>

<bundles_post_ra>
// kernel: tpu_custom_call.1
= control target key start
LH: loop header
LB: loop body
LE: loop exit
PB: predicated region body
PF: predicated region fallthrough
CT: control target
= control target key end

     0   :  { %s4477_s0 = inlined_call_operand.hbm [shape: f32[2,16,16,16], index: 0, kind: input, shape index: {}]   ;;  %s4478_s1 = inlined_call_operand.hbm [shape: f32[2,16,16,16], index: 1, kind: input, shape index: {}]   ;;  %s4479_s2 = inlined_call_operand.hbm [shape: f32[2,16,16,16], index: 2, kind: input, shape index: {}]   ;;  %s4480_s3 = inlined_call_operand.vmem [shape: f32[16,4], index: 3, kind: input, shape index: {}]   ;;  %s4481_s4 = inlined_call_operand.vmem [shape: f32[1,4], index: 4, kind: input, shape index: {}]   ;;  %s4482_s5 = inlined_call_operand.vmem [shape: f32[1,4], index: 5, kind: input, shape index: {}]   ;;  %s4483_s6 = inlined_call_operand.vmem [shape: f32[3,12,4], index: 6, kind: input, shape index: {}]   ;;  %s4484_s7 = inlined_call_operand.vmem [shape: f32[1,4], index: 7, kind: input, shape index: {}]   ;;  %s4485_s8 = inlined_call_operand.vmem [shape: f32[1,4], index: 8, kind: input, shape index: {}]   ;;  %s4486_s9 = inlined_call_operand.vmem [shape: f32[4,16], index: 9, kind: input, shape index: {}]   ;;  %s4487_s10 = inlined_call_operand.vmem [shape: f32[1,16], index: 10, kind: input, shape index: {}]   ;;  %s4488_s11 = inlined_call_operand.vmem [shape: f32[1,16], index: 11, kind: input, shape index: {}]   ;;  %s4489_s12 = inlined_call_operand.hbm [shape: f32[2,16,16,16], index: 12, kind: output, shape index: {}]  }
   0x1   :  { %4515 = sst [smem:[#allocation25_spill]] %s4477_s0 }
   0x2   :  { %4516 = sst [smem:[#allocation26_spill]] %s4478_s1 }
   0x3   :  { %4517 = sst [smem:[#allocation27_spill]] %s4479_s2 }
   0x4   :  { %4518 = sst [smem:[#allocation28_spill]] %s4480_s3 }
   0x5   :  { %4519 = sst [smem:[#allocation29_spill]] %s4481_s4 }
   0x6   :  { %4520 = sst [smem:[#allocation30_spill]] %s4482_s5 }
   0x7   :  { %4521 = sst [smem:[#allocation31_spill]] %s4483_s6 }
   0x8   :  { %4522 = sst [smem:[#allocation32_spill]] %s4484_s7 }
   0x9   :  { %4523 = sst [smem:[#allocation33_spill]] %s4485_s8 }
   0xa   :  { %4524 = sst [smem:[#allocation34_spill]] %s4486_s9 }
   0xb   :  { %4525 = sst [smem:[#allocation35_spill]] %s4487_s10 }
   0xc   :  { %4526 = sst [smem:[#allocation36_spill]] %s4488_s11 }
   0xd   :  { %4527 = sst [smem:[#allocation37_spill]] %s4489_s12 }
   0xe   :  { %17 = vsyncpa [#allocation3], 0 }
   0xf   :  { %19 = vsyncpa [#allocation3 + $0x1], 0 }
  0x10   :  { %20 = vsyncpa [#allocation6], 0 }
  0x11   :  { %22 = vsyncpa [#allocation6 + $0x1], 0 }
  0x12   :  { %23 = vsyncpa [#allocation4], 0 }
  0x13   :  { %25 = vsyncpa [#allocation4 + $0x1], 0  ;;  %s3307_s21 = smov 0   ;;  %s3309_s22 = smov 0  }
  0x14   :  { %s3311_s23 = smov 0   ;;  %s3313_s24 = smov 0  }
  0x15   :  { %s3315_s25 = smov 0   ;;  %s3317_s26 = smov 0  }
  0x16   :  { %s3319_s27 = smov 0   ;;  %s3321_s28 = smov 0  }
  0x17   :  { %s3323_s29 = smov 0   ;;  %s3325_s30 = smov 0  }
  0x18   :  { %s3327_s13 = smov 0   ;;  %s3329_s14 = smov 0  }
  0x19   :  { %s3331_s15 = smov 0   ;;  %s3333_s16 = smov 0  }
  0x1a LB: > { %4528 = sst [smem:[#allocation13_spill]] %s3194_s25  ;;  %s3378_s17 = sadd.s32 4294967295, %s3230_s16   ;;  %s3230_s16 = sphi %s3333_s16, %s31_s16   ;;  %s3226_s15 = sphi %s3331_s15, %s4604_s15   ;;  %s3222_s14 = sphi %s3329_s14, %s4603_s14   ;;  %s3218_s13 = sphi %s3327_s13, %s4602_s13   ;;  %s3214_s30 = sphi %s3325_s30, %s4612_s30   ;;  %s3210_s29 = sphi %s3323_s29, %s4600_s29   ;;  %s3206_s28 = sphi %s3321_s28, %s4611_s28   ;;  %s3202_s27 = sphi %s3319_s27, %s4610_s27   ;;  %s3198_s26 = sphi %s3317_s26, %s4609_s26   ;;  %s3194_s25 = sphi %s3315_s25, %s4608_s25   ;;  %s3190_s24 = sphi %s3313_s24, %s4597_s24   ;;  %s3186_s23 = sphi %s3311_s23, %s4607_s23   ;;  %s3182_s22 = sphi %s3309_s22, %s4606_s22   ;;  %s3178_s21 = sphi %s3307_s21, %s4605_s21  }
  0x1b   : > { %4529 = sst [smem:[#allocation14_spill]] %s3210_s29  ;;  %s40_s18 = sadd.s32 1, %s3222_s14 }
  0x1c   : > { %4530 = sst [smem:[#allocation15_spill]] %s3214_s30  ;;  %p41_p0 = scmp.ge.s32.totalorder %s40_s18, 2 }
  0x1d   : > { %4531 = sst [smem:[#allocation16_spill]] %s3218_s13  ;;  %s43_s19 = sadd.s32 1, %s3226_s15 }
  0x1e   : > { %4532 = sst [smem:[#allocation17_spill]] %s3222_s14  ;;  %p4503_p1 = scmp.eq.s32.totalorder %s3230_s16, 0 }
  0x1f   : > { %4533 = sst [smem:[#allocation18_spill]] %s3226_s15  ;;  %p4502_p2 = scmp.eq.s32.totalorder %s3378_s17, 0 }
  0x20   : > { %s4614_s18 = smov (%p41_p0, %s40_s18), 0  ;;  %s4616_s19 = smov (!%p41_p0, %s43_s19), %s3226_s15 }
  0x21   : > { %4534 = sst [smem:[#allocation19_spill]] %s4614_s18  ;;  %s48_s20 = ssub.s32 %s3222_s14, %s4614_s18 }
  0x22   : > { %s2379_s12 = sshll.u32 %s3222_s14, 3  ;;  %p45_p3 = scmp.ge.s32.totalorder %s4616_s19, 2 }
  0x23   : > { %s2380_s13 = sadd.s32 4294967295, %s2379_s12  ;;  %s2381_s11 = sshll.u32 %s4614_s18, 3 }
  0x24   : > { %p77_p4 = scmp.gt.s32.totalorder %s2380_s13, 0  ;;  %s4618_s19 = smov (%p45_p3, %s4616_s19), 0 }
  0x25   : > { %4535 = sst [smem:[#allocation20_spill]] %s4618_s19  ;;  %s3395_s10 = ssub.s32 %s3226_s15, %s4618_s19 }
  0x26   : > { %s4620_s13 = smov (!%p77_p4, %s2380_s13), 0  ;;  %4536 = sst [smem:[#allocation21_spill]] %s3395_s10 }
  0x27   : > { %s2382_s8 = sadd.s32 4294967295, %s2381_s11  ;;  %s3398_s7 = sor.u32 %s48_s20, %s3395_s10 }
  0x28   : > { %p81_p5 = scmp.gt.s32.totalorder %s2382_s8, 0  ;;  %s88_s9 = sadd.s32 1, %s3198_s26 }
  0x29   : > { %p95_p7 = scmp.ne.s32.totalorder %s3198_s26, %s3194_s25  ;;  %p101_p8 = scmp.ne.s32.totalorder %s3194_s25, %s3190_s24 }
  0x2a   : > { %s4622_s8 = smov (!%p81_p5, %s2382_s8), 0  ;;  %s3406_s19 = sadd.s32 8, %s2379_s12 }
  0x2b   : > { %s84_s18 = ssub.s32 %s4620_s13, %s4622_s8  ;;  %p3411_p9 = por %p95_p7, %p4503_p1 }
  0x2c   : > { %s85_s5 = sor.u32 %s84_s18, %s3395_s10  ;;  %p3417_p11 = por %p101_p8, %p4502_p2 }
  0x2d   : > { %p86_p10 = scmp.eq.s32.totalorder %s85_s5, 0  ;;  %s3422_s24 = sadd.s32 8, %s2381_s11 }
  0x2e   : > { %s4538_s6 = scalar_select %p3417_p11, 1, 0 }
  0x2f   : > { %s3425_s8 = scalar_select %p86_p10, %s3198_s26, %s88_s9  }
  0x30   : > { %4539 = sst [smem:[#allocation22_spill]] %s4538_s6  ;;  %p4501_p0 = scmp.lt.s32.totalorder %s3230_s16, 4 }
  0x31   : > { %4540 = sst [smem:[#allocation23_spill]] %s3425_s8  ;;  %s3430_s12 = sshll.u32 %s3226_s15, 5 }
  0x32   : > { %s429_s5 = sand.u32 1, %s3230_s16   ;;  %s431_s18 = sand.u32 1, %s3198_s26  }
  0x33   : > { %s2392_s4 = sshll.u32 %s431_s18, 4  ;;  %s2395_s30 = sshll.u32 %s4620_s13, 1 }
  0x34   : > { %s443_s3 = sadd.s32 %s2395_s30, %s3430_s12  ;;  %s433_s6 = scalar_lea.vmem [#allocation5], %s2392_s4 }
  0x35   : > { %s446_s25 = sshll.u32 %s433_s6, 4  ;;  %s2397_s2 = sshll.u32 %s443_s3, 7  ;;  %s3435_s25 = int_to_ptr.vmem [resolvable:$true] %s446_s25 }
  0x36   : > { %s4541_s1 = sld [smem:[#allocation26_spill]]  ;;  %p3446_p3 = pnand %p4501_p0, %p3411_p9 }
  0x37   : > { %s3452_s3 = scalar_lea.sflag [#allocation6], %s429_s5 }
  0x38   : > { %p2988_p8 = pneg %p3446_p3 }
  0x3c   : > { %s3440_s9 = scalar_lea.hbm %s4541_s1, %s2397_s2  ;;  %s2991_s10 = scalar_lea.hbm %s4541_s1, 8192 }
  0x3d   : > { %s2986_s4 = scalar_lea.hbm %s3440_s9, 256  ;;  %p2992_p9 = scmp.lt.u32.totalorder %s3440_s9, %s4541_s1 }
  0x3e   : > { %p2987_p7 = scmp.ne.s32.totalorder %s3440_s9, %s2986_s4  ;;  %p2993_p12 = scmp.lt.u32.totalorder %s2991_s10, %s2986_s4 }
  0x3f   : > { %p2995_p2 = scmp.lt.u32.totalorder %s2986_s4, %s3440_s9 }
  0x40   : > { %p2989_p10 = pnand %p2988_p8, %p2987_p7  ;;  %p2994_p0 = por %p2993_p12, %p2992_p9 }
  0x42   : > { %p2990_p13 = pneg %p2989_p10  ;;  %p2996_p1 = por %p2995_p2, %p2994_p0 }
  0x44   : > { %p2997_p6 = pnand %p2996_p1, %p2990_p13 }
  0x46   : > { %3000 = shalt.err (!%p2997_p6)
}
  0x47   : > { %s3001_s20 = scalar_lea.vmem %s3435_s25, 256  ;;  %s3232_s5 = smov [#allocation5]  }
  0x48   : > { %p3002_p7 = scmp.ne.s32.totalorder %s3435_s25, %s3001_s20  ;;  %s3006_s11 = sshll.u32 %s3232_s5, 4  ;;  %s3007_s11 = int_to_ptr.vmem [resolvable:$false] %s3006_s11 }
  0x49   : > { %s3008_s2 = scalar_lea.vmem %s3007_s11, 512  ;;  %p3009_p5 = scmp.lt.s32.totalorder %s3435_s25, %s3007_s11 }
  0x4a   : > { %p3004_p10 = pnand %p3002_p7, %p2988_p8  ;;  %p3010_p12 = scmp.lt.s32.totalorder %s3008_s2, %s3001_s20 }
  0x4c   : > { %p3005_p4 = pneg %p3004_p10  ;;  %p3011_p9 = por %p3010_p12, %p3009_p5 }
  0x4e   : > { %p3012_p2 = pnand %p3011_p9, %p3005_p4 }
  0x50   : > { %3015 = shalt.err (!%p3012_p2)
}
  0x51   : > { %s4504_s4 = smov 128   ;;  %s4506_s6 = smov 8  }
  0x52   : > { %2842 = dma.hbm_to_vmem [thread:$0]  (!%p3446_p3), %s3440_s9, 256, %s3435_s25, %s3452_s3, %s4504_s4, %s4504_s4, %s4506_s6  }
  0x53   : > { %p4543_p1 = scmp.lt.s32.totalorder %s3230_s16, 5  ;;  %p4544_p6 = scmp.ge.s32.totalorder %s3230_s16, 1 }
  0x54   : > { %s2378_s30 = sadd.s32 4294967294, %s3230_s16   ;;  %s52_s13 = sadd.s32 1, %s3210_s29 }
  0x55   : > { %p3487_p13 = pnand %p4544_p6, %p4543_p1  ;;  %p4546_p0 = scmp.eq.s32.totalorder %s3398_s7, 0 }
  0x56   : > { %p59_p4 = scmp.ne.s32.totalorder %s3210_s29, %s3206_s28  ;;  %p65_p5 = scmp.ne.s32.totalorder %s3206_s28, %s3202_s27 }
  0x57   : > { %s3496_s20 = scalar_select %p4546_p0, %s3210_s29, %s52_s13  }
  0x58   : > { %p352_p8 = scmp.eq.s32.totalorder %s3378_s17, 3  ;;  %p358_p7 = scmp.eq.s32.totalorder %s2378_s30, 3 }
  0x59   : > { %4547 = sst [smem:[#allocation24_spill]] %s3496_s20  ;;  %p4548_p10 = scmp.eq.s32.totalorder %s3230_s16, 0 }
  0x5a   : > { %p4550_p3 = scmp.eq.s32.totalorder %s3378_s17, 0  ;;  %p3515_p2 = por %p352_p8, %p59_p4 }
  0x5b   : > { %p3505_p12 = por %p4548_p10, %p59_p4  ;;  %p3519_p1 = por %p358_p7, %p65_p5 }
  0x5c   : > { %p3511_p9 = por %p4550_p3, %p65_p5  ;;  %s405_s5 = sand.u32 1, %s3210_s29  }
  0x5d   : > { %s4552_s7 = scalar_select %p3515_p2, 1, 0 }
  0x5e   : > { %s4551_s9 = scalar_select %p3511_p9, 1, 0 }
  0x5f   : > { %s4553_s18 = scalar_select %p3519_p1, 1, 0 }
  0x60   : > { %s2513_s11 = sshll.u32 %s3222_s14, 4  ;;  %s2387_s2 = sshll.u32 %s405_s5, 7 }
  0x61   : > { %s416_s30 = sadd.s32 %s2513_s11, %s3430_s12  ;;  %s409_s4 = scalar_lea.vmem [#allocation2], %s2387_s2 }
  0x62   : > { %s2391_s13 = sshll.u32 %s416_s30, 7  ;;  %s419_s6 = sshll.u32 %s409_s4, 4  ;;  %s3531_s6 = int_to_ptr.vmem [resolvable:$true] %s419_s6 }
  0x63   : > { %s4554_s0 = sld [smem:[#allocation25_spill]]  ;;  %p4555_p6 = scmp.lt.s32.totalorder %s3230_s16, 4 }
  0x64   : > { %s3541_s4 = scalar_lea.sflag [#allocation3], %s405_s5 }
  0x65   : > { %p3537_p0 = pnand %p4555_p6, %p3505_p12 }
  0x67   : > { %p3018_p5 = pneg %p3537_p0 }
  0x69   : > { %s3529_s20 = scalar_lea.hbm %s4554_s0, %s2391_s13  ;;  %s3021_s25 = scalar_lea.hbm %s4554_s0, 8192 }
  0x6a   : > { %s3016_s11 = scalar_lea.hbm %s3529_s20, 2048  ;;  %p3022_p10 = scmp.lt.u32.totalorder %s3529_s20, %s4554_s0 }
  0x6b   : > { %p3017_p4 = scmp.ne.s32.totalorder %s3529_s20, %s3016_s11  ;;  %p3023_p12 = scmp.lt.u32.totalorder %s3021_s25, %s3016_s11 }
  0x6c   : > { %p3025_p6 = scmp.lt.u32.totalorder %s3016_s11, %s3529_s20 }
  0x6d   : > { %p3019_p8 = pnand %p3018_p5, %p3017_p4  ;;  %p3024_p3 = por %p3023_p12, %p3022_p10 }
  0x6f   : > { %p3020_p7 = pneg %p3019_p8  ;;  %p3026_p1 = por %p3025_p6, %p3024_p3 }
  0x71   : > { %p3027_p2 = pnand %p3026_p1, %p3020_p7 }
  0x73   : > { %3030 = shalt.err (!%p3027_p2)
}
  0x74   : > { %s3031_s5 = scalar_lea.vmem %s3531_s6, 2048  ;;  %s3235_s13 = smov [#allocation2]  }
  0x75   : > { %p3032_p4 = scmp.ne.s32.totalorder %s3531_s6, %s3031_s5  ;;  %s3036_s1 = sshll.u32 %s3235_s13, 4  ;;  %s3037_s1 = int_to_ptr.vmem [resolvable:$false] %s3036_s1 }
  0x76   : > { %s3038_s15 = scalar_lea.vmem %s3037_s1, 4096  ;;  %p3039_p9 = scmp.lt.s32.totalorder %s3531_s6, %s3037_s1 }
  0x77   : > { %p3034_p8 = pnand %p3032_p4, %p3018_p5  ;;  %p3040_p10 = scmp.lt.s32.totalorder %s3038_s15, %s3031_s5 }
  0x79   : > { %p3035_p11 = pneg %p3034_p8  ;;  %p3041_p12 = por %p3040_p10, %p3039_p9 }
  0x7b   : > { %p3042_p3 = pnand %p3041_p12, %p3035_p11 }
  0x7d   : > { %3045 = shalt.err (!%p3042_p3)
}
  0x7e   : > { %s4557_s11 = smov 8   ;;  %s4558_s25 = smov 128  }
  0x7f   : > { %s4559_s2 = sld [smem:[#allocation21_spill]]  ;;  %p4560_p11 = scmp.lt.s32.totalorder %s3406_s19, 15 }
  0x80   : > { %2839 = dma.hbm_to_vmem [thread:$0]  (!%p3537_p0), %s3529_s20, 2048, %s3531_s6, %s3541_s4, %s4558_s25, %s4558_s25, %s4557_s11  }
  0x81   : > { %s4624_s19 = smov (!%p4560_p11, %s3406_s19), 15  ;;  %p4561_p9 = scmp.lt.s32.totalorder %s3422_s24, 15 }
  0x82   : > { %s124_s14 = sadd.s32 1, %s3186_s23  ;;  %p131_p2 = scmp.ne.s32.totalorder %s3186_s23, %s3182_s22 }
  0x83   : > { %s4626_s24 = smov (!%p4561_p9, %s3422_s24), 15  ;;  %p137_p1 = scmp.ne.s32.totalorder %s3182_s22, %s3178_s21 }
  0x84   : > { %s120_s30 = ssub.s32 %s4624_s19, %s4626_s24  ;;  %p4562_p5 = scmp.eq.s32.totalorder %s3230_s16, 0 }
  0x85   : > { %s121_s5 = sor.u32 %s120_s30, %s4559_s2  ;;  %p4564_p4 = scmp.eq.s32.totalorder %s3378_s17, 0 }
  0x86   : > { %p3586_p7 = por %p131_p2, %p4562_p5  ;;  %p122_p6 = scmp.eq.s32.totalorder %s121_s5, 0 }
  0x87   : > { %p3592_p8 = por %p137_p1, %p4564_p4  ;;  %s458_s20 = sand.u32 1, %s3186_s23  }
  0x88   : > { %s2400_s4 = sshll.u32 %s4624_s19, 1  ;;  %s2398_s24 = sshll.u32 %s458_s20, 4 }
  0x89   : > { %s4565_s6 = scalar_select %p3592_p8, 1, 0 }
  0x8a   : > { %s3598_s1 = scalar_select %p122_p6, %s3186_s23, %s124_s14  }
  0x8b   : > { %s470_s15 = sadd.s32 %s2400_s4, %s3430_s12  ;;  %s4566_s0 = sld [smem:[#allocation27_spill]] }
  0x8c   : > { %s2402_s21 = sshll.u32 %s470_s15, 7  ;;  %s460_s5 = scalar_lea.vmem [#allocation7], %s2398_s24 }
  0x8d   : > { %s473_s8 = sshll.u32 %s460_s5, 4  ;;  %p4567_p0 = scmp.lt.s32.totalorder %s3230_s16, 4  ;;  %s3606_s8 = int_to_ptr.vmem [resolvable:$true] %s473_s8 }
  0x8f   : > { %p3612_p10 = pnand %p4567_p0, %p3586_p7 }
  0x91   : > { %s3604_s29 = scalar_lea.hbm %s4566_s0, %s2402_s21  ;;  %p3048_p3 = pneg %p3612_p10 }
  0x92   : > { %s3046_s12 = scalar_lea.hbm %s3604_s29, 256  ;;  %s3051_s4 = scalar_lea.hbm %s4566_s0, 8192 }
  0x93   : > { %p3047_p12 = scmp.ne.s32.totalorder %s3604_s29, %s3046_s12  ;;  %p3052_p2 = scmp.lt.u32.totalorder %s3604_s29, %s4566_s0 }
  0x94   : > { %p3053_p1 = scmp.lt.u32.totalorder %s3051_s4, %s3046_s12  ;;  %p3055_p7 = scmp.lt.u32.totalorder %s3046_s12, %s3604_s29 }
  0x95   : > { %p3049_p11 = pnand %p3048_p3, %p3047_p12 }
  0x96   : > { %p3054_p5 = por %p3053_p1, %p3052_p2 }
  0x97   : > { %p3050_p9 = pneg %p3049_p11 }
  0x98   : > { %p3056_p6 = por %p3055_p7, %p3054_p5 }
  0x9a   : > { %p3057_p4 = pnand %p3056_p6, %p3050_p9 }
  0x9c   : > { %3060 = shalt.err (!%p3057_p4)
}
  0x9d   : > { %s3061_s15 = scalar_lea.vmem %s3606_s8, 256  ;;  %s3236_s21 = smov [#allocation7]  }
  0x9e   : > { %p3062_p0 = scmp.ne.s32.totalorder %s3606_s8, %s3061_s15  ;;  %s3066_s2 = sshll.u32 %s3236_s21, 4  ;;  %s3067_s2 = int_to_ptr.vmem [resolvable:$false] %s3066_s2 }
  0x9f   : > { %s3068_s30 = scalar_lea.vmem %s3067_s2, 512  ;;  %p3069_p8 = scmp.lt.s32.totalorder %s3606_s8, %s3067_s2 }
  0xa0   : > { %p3064_p12 = pnand %p3062_p0, %p3048_p3  ;;  %p3070_p2 = scmp.lt.s32.totalorder %s3068_s30, %s3061_s15 }
  0xa2   : > { %p3065_p11 = pneg %p3064_p12  ;;  %p3071_p1 = por %p3070_p2, %p3069_p8 }
  0xa4   : > { %p3072_p5 = pnand %p3071_p1, %p3065_p11 }
  0xa6   : > { %3075 = shalt.err (!%p3072_p5)
}
  0xa7   : > { %2845 = dma.hbm_to_vmem [thread:$0]  (!%p3612_p10), %s3604_s29, 256, %s3606_s8, %s3452_s3, %s4558_s25, %s4558_s25, %s4557_s11  }
  0xa8   : > { %485 = sbr.rel (%p3487_p13) target bundleno = 1106 (0x452), region = 68  ;;  %s3648_s5 = sand.u32 (!%p3487_p13), 1, %s3206_s28  }
  0xa9   : > { %s2404_s12 = sshll.u32 (!%p3487_p13), %s3648_s5, 7  ;;  %s488_s14 = scalar_lea.sflag (!%p3487_p13), [#allocation3], %s3648_s5 }
  0xaa   : > { %s3654_s19 = scalar_lea.vmem (!%p3487_p13), [#allocation2], %s2404_s12  ;;  %p4569_p8 = scmp.ne.s32.totalorder (!%p3487_p13), %s4551_s9, 0 }
  0xaf   : > { %3161 = dma.done.wait (%p4569_p8), %s488_s14, 2048  }
  0xb0   : > { %3163 = vsyncadd (%p4569_p8), %s488_s14, 4294965248  ;;  %s4570_s29 = sld [smem:[#allocation13_spill]]  ;;  %s4571_s8 = sld [smem:[#allocation22_spill]] }
  0xb1   : > { %s496_s3 = sand.u32 1, %s3378_s17  }
  0xb2   : > { %s497_s25 = scalar_lea.sflag [#allocation6], %s496_s3 }
  0xb6   : > { %s498_s10 = sand.u32 1, %s4570_s29   ;;  %p4572_p13 = scmp.ne.s32.totalorder %s4571_s8, 0 }
  0xb7   : > { %s2405_s11 = sshll.u32 %s498_s10, 4 }
  0xb8   : > { %s500_s20 = scalar_lea.vmem [#allocation5], %s2405_s11 }
  0xb9   : > { %3165 = dma.done.wait (%p4572_p13), %s497_s25, 256  }
  0xba   : > { %3167 = vsyncadd (%p4572_p13), %s497_s25, 4294967040  ;;  %s507_s4 = sand.u32 1, %s3182_s22   ;;  %p4573_p10 = scmp.ne.s32.totalorder %s4565_s6, 0 }
  0xbb   : > { %s2406_s13 = sshll.u32 %s507_s4, 4 }
  0xbc   : > { %s509_s24 = scalar_lea.vmem [#allocation7], %s2406_s13 }
  0xbd   : > { %3169 = dma.done.wait (%p4573_p10), %s497_s25, 256  }
  0xbe   : > { %3171 = vsyncadd (%p4573_p10), %s497_s25, 4294967040  ;;  %vm590_vm0 = vcmask 130048   ;;  %s4574_s15 = sld [smem:[#allocation28_spill]]  ;;  %v574_v2 = vld [vmem:[%s3654_s19] sm:$0xff]  ;;  %v575_v5 = vld [vmem:[%s3654_s19 + $0x8] sm:$0xff]  ;;  %s4576_s6 = sld [smem:[#allocation15_spill]] }
  0xbf   : > { %2616 = vmatprep.mubr.msk.f32.mxu0 %vm590_vm0, %v574_v2  ;;  %v844_v4 = vld [vmem:[%s500_s20] sm:$0xff]  ;;  %v845_v6 = vld [vmem:[%s500_s20 + $0x8] sm:$0xff]  ;;  %s4577_s3 = sld [smem:[#allocation29_spill]]  ;;  %s4578_s25 = sld [smem:[#allocation31_spill]]  ;;  %vm1392_vm1 = vcmask 1043456   ;;  %vm3237_vm2 = vmmov 1  }
  0xc0   : > { %2644 = vmatprep.mubr.msk.f32.mxu1 %vm590_vm0, %v844_v4  ;;  %v576_v7 = vld [vmem:[%s3654_s19 + $0x10] sm:$0xff]  ;;  %v577_v9 = vld [vmem:[%s3654_s19 + $0x18] sm:$0xff]  ;;  %v578_v11 = vld [vmem:[%s3654_s19 + $0x20] sm:$0xff]  ;;  %s4580_s9 = sld [smem:[#allocation30_spill]]  ;;  %vm1115_vm5 = vcmask 1046528   ;;  %vm1054_vm6 = vcmask 1040384  }
  0xc1   : > { %v933_v8 = vld [vmem:[%s509_s24] sm:$0xff]  ;;  %v934_v10 = vld [vmem:[%s509_s24 + $0x8] sm:$0xff]  ;;  %vm3731_vm3 = vmpackc.low %vm1392_vm1, %vm3237_vm2  ;;  %s3239_s30 = smov 8   ;;  %vm1296_vm8 = vcmask 31744   ;;  %vm1317_vm9 = vcmask 64512   ;;  %vm1343_vm10 = vcmask 97280  }
  0xc2   : > { %v579_v12 = vld [vmem:[%s3654_s19 + $0x28] sm:$0xff]  ;;  %v580_v13 = vld [vmem:[%s3654_s19 + $0x30] sm:$0xff]  ;;  %v581_v14 = vld [vmem:[%s3654_s19 + $0x38] sm:$0xff]  ;;  %s4587_s17 = sld [smem:[#allocation34_spill]]  ;;  %s4589_s8 = sld [smem:[#allocation33_spill]] }
  0xc3   : > { %v582_v15 = vld [vmem:[%s3654_s19 + $0x40] sm:$0xff]  ;;  %v583_v16 = vld [vmem:[%s3654_s19 + $0x48] sm:$0xff]  ;;  %v584_v17 = vld [vmem:[%s3654_s19 + $0x50] sm:$0xff]  ;;  %s4590_s11 = sld [smem:[#allocation35_spill]]  ;;  %s4591_s13 = sld [smem:[#allocation36_spill]] }
  0xc4   : > { %s4575_s2 = smov %s4574_s15  ;;  %v570_v0 = vld [vmem:[%s4574_s15] sm:$0xff]  ;;  %v585_v18 = vld [vmem:[%s3654_s19 + $0x58] sm:$0xff]  ;;  %v587_v20 = vld [vmem:[%s3654_s19 + $0x68] sm:$0xff]  ;;  %p1022_p3 = scmp.gt.s32.totalorder %s4576_s6, 0 }
  0xc5   : > { %v571_v1 = vld [vmem:[%s4575_s2 + $0x8] sm:$0xff]  ;;  %v586_v19 = vld [vmem:[%s3654_s19 + $0x60] sm:$0xff]  ;;  %v588_v21 = vld [vmem:[%s3654_s19 + $0x70] sm:$0xff]  ;;  %s4579_s20 = smov %s4578_s25  ;;  %p1028_p9 = scmp.lt.s32.totalorder %s4576_s6, 1 }
  0xc6   : > { %v2764_v3 = vpack.c.bf16 %v571_v1, %v570_v0  ;;  %v589_v22 = vld [vmem:[%s3654_s19 + $0x78] sm:$0xff]  ;;  %s1023_s14 = scalar_select %p1022_p3, 1, 0  ;;  %v3717_v23 = vld [vmem:[%s4577_s3] ss:$0 sm:$0xff]  ;;  %v2430_v24 = vld [vmem:[%s4578_s25 + $0x10] sm:$0xff] }
  0xc7   : > { %v2431_v25 = vld [vmem:[%s4579_s20 + $0x18] sm:$0xf]  ;;  %v3728_v26 = vld [vmem:[%s4580_s9] ss:$0 sm:$0xff]  ;;  %s3238_s15 = smov 4   ;;  %s4318_s24 = scalar_lea.vmem [#allocation8], %s2404_s12 }
  0xc8   : > { %2765 = vmatprep.subr.bf16.mxu0 %v2764_v3  ;;  %2769 = vmatprep.subr.bf16.mxu1 %v2764_v3  ;;  %v2776_v29 = vpack.c.bf16 %v2431_v25, %v2430_v24  ;;  %v1024_v35 = vstv %s1023_s14  ;;  %s3781_s21 = scalar_select %p1028_p9, 1, 0 }
  0xc9   : > { %2767 = vmatpush3.bf16.msra.mxu0 %v2764_v3  ;;  %2771 = vmatpush3.bf16.msra.mxu1 %v2764_v3  ;;  %vm3751_vm4 = vcmp.eq.s32.totalorder %v1024_v35, 1  ;;  %s4592_s12 = sld [smem:[#allocation16_spill]]  ;;  %s2222_s10 = scalar_lea.sflag [#allocation4], %s3648_s5 }
  0xca   : > { %2773 = vmatprep.subr.bf16.mxu1 %v2764_v3  ;;  %2778 = vmatprep.subr.msk.bf16.mxu0 %vm3731_vm3, %v2776_v29  ;;  %p4594_p6 = scmp.ne.s32.totalorder %s4552_s7, 0 }
  0xcc   : > { %2617 = vmatmul.mubr.msk.f32.vlgmr.msra.gmra.mrb[0].mxu0 %vm590_vm0, %v575_v5  ;;  %2645 = vmatmul.mubr.msk.f32.vlgmr.msra.gmra.mrb[0].mxu1 %vm590_vm0, %v845_v6 }
  0xcd   : > { %2619 = vmatprep.mubr.msk.f32.mxu0 %vm590_vm0, %v576_v7  ;;  %2775 = vmatpush3.bf16.msra.mxu1 %v2764_v3 }
  0xce   : > { %2651 = vmatprep.mubr.msk.f32.mxu1 %vm590_vm0, %v933_v8  ;;  %2794 = vmatprep.subr.msk.bf16.mxu1 %vm3731_vm3, %v2776_v29 }
  0xcf   : > { %2781 = vmatpush3.bf16.msk.msra.mxu0 %vm3731_vm3, %v2776_v29  ;;  %s2509_s9 = sshll.u32 %s4592_s12, 5 }
  0xd0   : > { %2620 = vmatmul.mubr.msk.f32.gmra.mrb[2].mxu0 %vm590_vm0, %v577_v9  ;;  %2652 = vmatmul.mubr.msk.f32.vlgmr.msra.gmra.mrb[2].mxu1 %vm590_vm0, %v934_v10 }
  0xd1   : > { %2622 = vmatprep.mubr.msk.f32.mxu0 %vm590_vm0, %v578_v11  ;;  %2795 = vmatpush3.bf16.msk.msra.mxu1 %vm3731_vm3, %v2776_v29  ;;  %v1030_v11 = vstv %s3781_s21  ;;  %s4588_s21 = sld [smem:[#allocation32_spill]] }
  0xd2   : > { %vm3817_vm7 = vcmp.eq.s32.totalorder %v1030_v11, 1 }
  0xd4   : > { %2623 = vmatmul.mubr.msk.f32.gmra.mrb[4].mxu0 %vm590_vm0, %v579_v12 }
  0xd5   : > { %2625 = vmatprep.mubr.msk.f32.mxu0 %vm590_vm0, %v580_v13 }
  0xd8   : > { %2626 = vmatmul.mubr.msk.f32.gmra.mrb[6].mxu0 %vm590_vm0, %v581_v14 }
  0xd9   : > { %2628 = vmatprep.mubr.msk.f32.mxu0 %vm590_vm0, %v582_v15 }
  0xdc   : > { %2629 = vmatmul.mubr.msk.f32.gmra.mrb[8].mxu0 %vm590_vm0, %v583_v16 }
  0xdd   : > { %2631 = vmatprep.mubr.msk.f32.mxu0 %vm590_vm0, %v584_v17 }
  0xe0   : > { %2632 = vmatmul.mubr.msk.f32.gmra.mrb[10].mxu0 %vm590_vm0, %v585_v18 }
  0xe1   : > { %2634 = vmatprep.mubr.msk.f32.mxu0 %vm590_vm0, %v586_v19 }
  0xe4   : > { %2635 = vmatmul.mubr.msk.f32.gmra.mrb[12].mxu0 %vm590_vm0, %v587_v20 }
  0xe5   : > { %2637 = vmatprep.mubr.msk.f32.mxu0 %vm590_vm0, %v588_v21 }
  0xe8   : > { %2638 = vmatmul.mubr.msk.f32.gmra.mrb[14].mxu0 %vm590_vm0, %v589_v22 }
 0x19f   : > { %v2618_v27 = vpop.f32.mrb[0].mxu0  ;;  %v2646_v28 = vpop.f32.mrb[0].mxu1 }
 0x1a0   : > { %v791_v31 = vmul.f32 %v2618_v27, %v3717_v23  ;;  %v705_v32 = vpop.f32.mrb[1].mxu0  ;;  %v928_v33 = vmul.f32 %v2646_v28, %v3717_v23  ;;  %v918_v34 = vpop.f32.mrb[1].mxu1 }
 0x1a1   : > { %v790_v36 = vmul.f32 %v3717_v23, %v705_v32  ;;  %v927_v37 = vmul.f32 %v3717_v23, %v918_v34 }
 0x1a2   : > { %v813_v38 = vadd.f32 %v3728_v26, %v791_v31  ;;  %v930_v39 = vadd.f32 %v3728_v26, %v928_v33 }
 0x1a3   : > { %v812_v40 = vadd.f32 %v3728_v26, %v790_v36  ;;  %v929_v41 = vadd.f32 %v3728_v26, %v927_v37  ;;  %v2621_v42 = vpop.f32.mrb[2].mxu0  ;;  %v2653_v44 = vpop.f32.mrb[2].mxu1 }
 0x1a4   : > { %v3756_v45 = vmax.f32 %v813_v38, 0.0  ;;  %v932_v46 = vmax.f32 %v930_v39, 0.0  ;;  %v793_v47 = vmul.f32 %v2621_v42, %v3717_v23  ;;  %v715_v48 = vpop.f32.mrb[3].mxu0  ;;  %v1017_v49 = vmul.f32 %v2653_v44, %v3717_v23  ;;  %v1007_v50 = vpop.f32.mrb[3].mxu1 }
 0x1a5   : > { %v3760_v51 = vmax.f32 %v812_v40, 0.0  ;;  %v931_v52 = vmax.f32 %v929_v41, 0.0  ;;  %v792_v53 = vmul.f32 %v3717_v23, %v715_v48  ;;  %v1016_v54 = vmul.f32 %v3717_v23, %v1007_v50 }
 0x1a6   : > { %v815_v55 = vadd.f32 %v3728_v26, %v793_v47  ;;  %1172 = vrot.lane.b32.xlu1 %v3756_v45, %s3238_s15  ;;  %v3772_v58 = vsel %vm3751_vm4, %v932_v46, 0.0  ;;  %v1120_v60 = vrot.slane %v3756_v45, 1  ;;  %v1019_v22 = vadd.f32 %v3728_v26, %v1017_v49 }
 0x1a7   : > { %v814_v56 = vadd.f32 %v3728_v26, %v792_v53  ;;  %1170 = vrot.lane.b32.xlu0 %v3760_v51, %s3238_s15  ;;  %v2624_v57 = vpop.f32.mrb[4].mxu0  ;;  %v3776_v59 = vsel %vm3751_vm4, %v931_v52, 0.0  ;;  %v1119_v3 = vrot.slane %v3760_v51, 1  ;;  %v1117_v5 = vrot.slane %v3772_v58, 1 }
 0x1a8   : > { %v3783_v61 = vmax.f32 %v815_v55, 0.0  ;;  %v795_v62 = vmul.f32 %v2624_v57, %v3717_v23  ;;  %v725_v63 = vpop.f32.mrb[5].mxu0  ;;  %v1116_v0 = vrot.slane %v3776_v59, 1  ;;  %v1157_v17 = vsel %vm1115_vm5, %v1120_v60, 0.0 }
 0x1a9   : > { %v3787_v1 = vmax.f32 %v814_v56, 0.0  ;;  %v794_v2 = vmul.f32 %v3717_v23, %v725_v63  ;;  %v1121_v9 = vsel %vm1115_vm5, %v1119_v3, %v1120_v60  ;;  %v1059_v25 = vrot.slane %v3756_v45, 7 }
 0x1aa   : > { %v817_v4 = vadd.f32 %v3728_v26, %v795_v62  ;;  %1168 = vrot.lane.b32.xlu1 %v3772_v58, %s3238_s15  ;;  %v1123_v6 = vrot.slane %v3783_v61, 1  ;;  %v1118_v15 = vsel %vm1115_vm5, %v1116_v0, %v1117_v5  ;;  %v1018_v31 = vadd.f32 %v3728_v26, %v1016_v54 }
 0x1ab   : > { %v816_v7 = vadd.f32 %v3728_v26, %v794_v2  ;;  %1166 = vrot.lane.b32.xlu0 %v3776_v59, %s3238_s15  ;;  %v2627_v8 = vpop.f32.mrb[6].mxu0  ;;  %v1122_v10 = vrot.slane %v3787_v1, 1  ;;  %v1156_v34 = vsel %vm1115_vm5, %v1117_v5, 0.0  ;;  %v1021_v36 = vmax.f32 %v1019_v22, 0.0 }
 0x1ac   : > { %v3802_v12 = vmax.f32 %v817_v4, 0.0  ;;  %v797_v13 = vmul.f32 %v2627_v8, %v3717_v23  ;;  %v735_v14 = vpop.f32.mrb[7].mxu0  ;;  %v1020_v40 = vmax.f32 %v1018_v31, 0.0  ;;  %v1058_v41 = vrot.slane %v3760_v51, 7 }
 0x1ad   : > { %v3806_v16 = vmax.f32 %v816_v7, 0.0  ;;  %v796_v18 = vmul.f32 %v3717_v23, %v735_v14  ;;  %v3811_v19 = vsel %vm1115_vm5, %v1122_v10, %v1123_v6  ;;  %v1056_v42 = vrot.slane %v3772_v58, 7 }
 0x1ae   : > { %v819_v20 = vadd.f32 %v3728_v26, %v797_v13  ;;  %1242 = vrot.lane.b32.xlu1 %v1157_v17, %s3239_s30  ;;  %v1126_v21 = vrot.slane %v3802_v12, 1  ;;  %v1062_v45 = vrot.slane %v3783_v61, 7  ;;  %v1055_v46 = vrot.slane %v3776_v59, 7 }
 0x1af   : > { %v818_v27 = vadd.f32 %v3728_v26, %v796_v18  ;;  %1240 = vrot.lane.b32.xlu0 %v1121_v9, %s3239_s30  ;;  %v2630_v28 = vpop.f32.mrb[8].mxu0  ;;  %v1125_v29 = vrot.slane %v3806_v16, 1  ;;  %v3853_v54 = vsel %vm3817_vm7, %v1021_v36, 0.0  ;;  %v3857_v55 = vsel %vm3817_vm7, %v1020_v40, 0.0 }
 0x1b0   : > { %v3826_v32 = vmax.f32 %v819_v20, 0.0  ;;  %v799_v33 = vmul.f32 %v2630_v28, %v3717_v23  ;;  %v745_v35 = vpop.f32.mrb[9].mxu0  ;;  %v1061_v56 = vrot.slane %v3787_v1, 7  ;;  %v1158_v63 = vsel %vm1115_vm5, %v1123_v6, 0.0 }
 0x1b1   : > { %v3830_v37 = vmax.f32 %v818_v27, 0.0  ;;  %v798_v38 = vmul.f32 %v3717_v23, %v745_v35  ;;  %v3836_v39 = vsel %vm1115_vm5, %v1125_v29, %v1126_v21  ;;  %v1143_v2 = vrot.slane %v3857_v55, 1 }
 0x1b2   : > { %v821_v43 = vadd.f32 %v3728_v26, %v799_v33  ;;  %1238 = vrot.lane.b32.xlu1 %v1156_v34, %s3239_s30  ;;  %v1129_v44 = vrot.slane %v3826_v32, 1  ;;  %v1065_v3 = vrot.slane %v3802_v12, 7  ;;  %v1144_v8 = vrot.slane %v3853_v54, 1 }
 0x1b3   : > { %v820_v47 = vadd.f32 %v3728_v26, %v798_v38  ;;  %1236 = vrot.lane.b32.xlu0 %v1118_v15, %s3239_s30  ;;  %v2633_v48 = vpop.f32.mrb[10].mxu0  ;;  %v1128_v49 = vrot.slane %v3830_v37, 1  ;;  %v3885_v11 = vsel %vm1054_vm6, %v1058_v41, %v1059_v25  ;;  %v1068_v18 = vrot.slane %v3826_v32, 7 }
 0x1b4   : > { %v3848_v50 = vmax.f32 %v821_v43, 0.0  ;;  %v801_v52 = vmul.f32 %v2633_v48, %v3717_v23  ;;  %v755_v53 = vpop.f32.mrb[11].mxu0  ;;  %v3896_v17 = vsel %vm1115_vm5, %v1144_v8, 0.0  ;;  %v3902_v24 = vsel %vm1115_vm5, %v1143_v2, %v1144_v8  ;;  %v1339_v2 = vld [vmem:[%s4579_s20 + $0x8] sm:$0xf] }
 0x1b5   : > { %v3860_v57 = vmax.f32 %v820_v47, 0.0  ;;  %v800_v58 = vmul.f32 %v3717_v23, %v755_v53  ;;  %v3866_v60 = vsel %vm1115_vm5, %v1128_v49, %v1129_v44  ;;  %v3914_v38 = vsel %vm1054_vm6, %v1055_v46, %v1056_v42 }
 0x1b6   : > { %v823_v62 = vadd.f32 %v3728_v26, %v801_v52  ;;  %1176 = vrot.lane.b32.xlu1 %v3783_v61, %s3238_s15  ;;  %v1132_v0 = vrot.slane %v3848_v50, 1  ;;  %v1064_v61 = vrot.slane %v3806_v16, 7  ;;  %v1067_v40 = vrot.slane %v3830_v37, 7 }
 0x1b7   : > { %v822_v4 = vadd.f32 %v3728_v26, %v800_v58  ;;  %1174 = vrot.lane.b32.xlu0 %v3787_v1, %s3238_s15  ;;  %v2636_v5 = vpop.f32.mrb[12].mxu0  ;;  %v1131_v7 = vrot.slane %v3860_v57, 1  ;;  %v3926_v53 = vsel %vm1054_vm6, %v1061_v56, %v1062_v45  ;;  %v1071_v45 = vrot.slane %v3848_v50, 7 }
 0x1b8   : > { %v839_v9 = vmax.f32 %v823_v62, 0.0  ;;  %v803_v6 = vmul.f32 %v2636_v5, %v3717_v23  ;;  %v765_v10 = vpop.f32.mrb[13].mxu0 }
 0x1b9   : > { %v3887_v13 = vmax.f32 %v822_v4, 0.0  ;;  %v802_v14 = vmul.f32 %v3717_v23, %v765_v10  ;;  %v3893_v15 = vsel %vm1115_vm5, %v1131_v7, %v1132_v0  ;;  %v1070_v4 = vrot.slane %v3860_v57, 7 }
 0x1ba   : > { %1246 = vrot.lane.b32.xlu1 %v1158_v63, %s3239_s30  ;;  %v1135_v20 = vrot.slane %v839_v9, 1  ;;  %v825_v22 = vadd.f32 %v3728_v26, %v803_v6  ;;  %v1074_v25 = vrot.slane %v839_v9, 7  ;;  %v1338_v63 = vld [vmem:[%s4579_s20] sm:$0xff] }
 0x1bb   : > { %v1073_v27 = vrot.slane %v3887_v13, 7  ;;  %1244 = vrot.lane.b32.xlu0 %v3811_v19, %s3239_s30  ;;  %v824_v28 = vadd.f32 %v3728_v26, %v802_v14  ;;  %v1134_v29 = vrot.slane %v3887_v13, 1  ;;  %v2639_v31 = vpop.f32.mrb[14].mxu0 }
 0x1bc   : > { %v1162_v33 = vsel %vm1115_vm5, %v1135_v20, 0.0  ;;  %v841_v34 = vmax.f32 %v825_v22, 0.0  ;;  %v805_v35 = vmul.f32 %v2639_v31, %v3717_v23  ;;  %v775_v36 = vpop.f32.mrb[15].mxu0  ;;  %v3961_v22 = vsel %vm1054_vm6, %v1064_v61, %v1065_v3 }
 0x1bd   : > { %v3917_v43 = vmax.f32 %v824_v28, 0.0  ;;  %v1136_v19 = vsel %vm1115_vm5, %v1134_v29, %v1135_v20  ;;  %v804_v47 = vmul.f32 %v3717_v23, %v775_v36  ;;  %v1083_v23 = vrot.slane %v3853_v54, 7 }
 0x1be   : > { %1262 = vrot.lane.b32.xlu1 %v1162_v33, %s3239_s30  ;;  %v1077_v48 = vrot.slane %v841_v34, 7  ;;  %v827_v49 = vadd.f32 %v3728_v26, %v805_v35  ;;  %v1138_v52 = vrot.slane %v841_v34, 1  ;;  %v3956_v20 = vpack.c.bf16 %v1339_v2, %v1338_v63 }
 0x1bf   : > { %1192 = vrot.lane.b32.xlu0 %v839_v9, %s3238_s15  ;;  %v1076_v42 = vrot.slane %v3917_v43, 7  ;;  %v826_v58 = vadd.f32 %v3728_v26, %v804_v47  ;;  %v1137_v62 = vrot.slane %v3917_v43, 1  ;;  %v3944_v26 = vsel %vm1054_vm6, %v1073_v27, %v1074_v25 }
 0x1c0   : > { %v843_v5 = vmax.f32 %v827_v49, 0.0  ;;  %v1082_v9 = vrot.slane %v3857_v55, 7  ;;  %v3970_v29 = vsel %vm1054_vm6, %v1067_v40, %v1068_v18  ;;  %2784 = vmatprep.subr.msk.bf16.mxu1 %vm3731_vm3, %v3956_v20  ;;  %v3978_v3 = vsel %vm1054_vm6, %v1070_v4, %v1071_v45  ;;  %v2466_v45 = vld [vmem:[%s4579_s20 + $0x20] sm:$0xff] }
 0x1c1   : > { %v3946_v7 = vmax.f32 %v826_v58, 0.0  ;;  %v1139_v8 = vsel %vm1115_vm5, %v1137_v62, %v1138_v52  ;;  %v3953_v6 = vsel %vm1054_vm6, %v1076_v42, %v1077_v48  ;;  %v1163_v36 = vsel %vm1115_vm5, %v1138_v52, 0.0 }
 0x1c2   : > { %1260 = vrot.lane.b32.xlu1 %v1136_v19, %s3239_s30  ;;  %v1080_v10 = vrot.slane %v843_v5, 7  ;;  %v1141_v14 = vrot.slane %v843_v5, 1  ;;  %v3987_v35 = vsel %vm1054_vm6, %v1082_v9, %v1083_v23  ;;  %v3991_v18 = vsel %vm1054_vm6, 0.0, %v1082_v9 }
 0x1c3   : > { %1190 = vrot.lane.b32.xlu0 %v3887_v13, %s3238_s15  ;;  %v1079_v25 = vrot.slane %v3946_v7, 7  ;;  %v1140_v28 = vrot.slane %v3946_v7, 1  ;;  %v1160_v47 = vsel %vm1115_vm5, %v1129_v44, 0.0  ;;  %v1111_v9 = vsel %vm1054_vm6, 0.0, %v1073_v27 }
 0x1c4   : > { %v1164_v19 = vsel %vm1115_vm5, %v1141_v14, 0.0  ;;  %v1112_v13 = vsel %vm1054_vm6, 0.0, %v1076_v42 }
 0x1c5   : > { %v1142_v31 = vsel %vm1115_vm5, %v1140_v28, %v1141_v14  ;;  %v3984_v33 = vsel %vm1054_vm6, %v1079_v25, %v1080_v10 }
 0x1c6   : > { %1196 = vrot.lane.b32.xlu1 %v841_v34, %s3238_s15  ;;  %v1159_v34 = vsel %vm1115_vm5, %v1126_v21, 0.0 }
 0x1c7   : > { %1194 = vrot.lane.b32.xlu0 %v3917_v43, %s3238_s15 }
 0x1ca   : > { %1266 = vrot.lane.b32.xlu1 %v1163_v36, %s3239_s30 }
 0x1cb   : > { %1264 = vrot.lane.b32.xlu0 %v1139_v8, %s3239_s30 }
 0x1ce   : > { %1200 = vrot.lane.b32.xlu1 %v843_v5, %s3238_s15 }
 0x1cf   : > { %1198 = vrot.lane.b32.xlu0 %v3946_v7, %s3238_s15 }
 0x1d2   : > { %1270 = vrot.lane.b32.xlu1 %v1164_v19, %s3239_s30 }
 0x1d3   : > { %1268 = vrot.lane.b32.xlu0 %v1142_v31, %s3239_s30 }
 0x1d6   : > { %1180 = vrot.lane.b32.xlu1 %v3802_v12, %s3238_s15  ;;  %v1161_v12 = vsel %vm1115_vm5, %v1132_v0, 0.0 }
 0x1d7   : > { %1178 = vrot.lane.b32.xlu0 %v3806_v16, %s3238_s15 }
 0x1da   : > { %1250 = vrot.lane.b32.xlu1 %v1159_v34, %s3239_s30 }
 0x1db   : > { %1248 = vrot.lane.b32.xlu0 %v3836_v39, %s3239_s30 }
 0x1de   : > { %1184 = vrot.lane.b32.xlu1 %v3826_v32, %s3238_s15 }
 0x1df   : > { %1182 = vrot.lane.b32.xlu0 %v3830_v37, %s3238_s15 }
 0x1e2   : > { %1254 = vrot.lane.b32.xlu1 %v1160_v47, %s3239_s30 }
 0x1e3   : > { %1252 = vrot.lane.b32.xlu0 %v3866_v60, %s3239_s30 }
 0x1e6   : > { %1188 = vrot.lane.b32.xlu1 %v3848_v50, %s3238_s15  ;;  %v1106_v50 = vsel %vm1054_vm6, 0.0, %v1058_v41 }
 0x1e7   : > { %1186 = vrot.lane.b32.xlu0 %v3860_v57, %s3238_s15 }
 0x1ea   : > { %1258 = vrot.lane.b32.xlu1 %v1161_v12, %s3239_s30 }
 0x1eb   : > { %1256 = vrot.lane.b32.xlu0 %v3893_v15, %s3239_s30 }
 0x1ee   : > { %1204 = vrot.lane.b32.xlu1 %v3853_v54, %s3238_s15 }
 0x1ef   : > { %1202 = vrot.lane.b32.xlu0 %v3857_v55, %s3238_s15  ;;  %s2238_s15 = sshll.u32 %s4318_s24, 4  ;;  %s4389_s15 = int_to_ptr.vmem [resolvable:$true] %s2238_s15 }
 0x1f2   : > { %1274 = vrot.lane.b32.xlu1 %v3896_v17, %s3239_s30 }
 0x1f3   : > { %1272 = vrot.lane.b32.xlu0 %v3902_v24, %s3239_s30 }
 0x218   : > { %v1173_v21 = vpop.permute.xlu1 %1172 }
 0x219   : > { %v1171_v32 = vpop.permute.xlu0 %1170  ;;  %v1300_v0 = vsel %vm1296_vm8, %v3885_v11, %v1173_v21  ;;  %v1107_v11 = vsel %vm1054_vm6, 0.0, %v1061_v56 }
 0x21a   : > { %v1299_v55 = vsel %vm1296_vm8, %v1106_v50, %v1171_v32 }
 0x21c   : > { %v4042_v39 = vpop.permute.xlu1 %1168 }
 0x21d   : > { %v4044_v44 = vpop.permute.xlu0 %1166 }
 0x220   : > { %v1243_v54 = vpop.permute.xlu1 %1242 }
 0x221   : > { %v1241_v60 = vpop.permute.xlu0 %1240  ;;  %v4056_v17 = vsel %vm1317_vm9, %v1300_v0, %v1243_v54  ;;  %v1105_v54 = vsel %vm1054_vm6, 0.0, %v1055_v46 }
 0x222   : > { %v4053_v15 = vsel %vm1317_vm9, %v1299_v55, %v1241_v60  ;;  %v1297_v0 = vsel %vm1296_vm8, %v1105_v54, %v4044_v44 }
 0x223   : > { %2658 = vmatprep.mubr.msk.f32.mxu0 %vm1343_vm10, %v4053_v15 }
 0x224   : > { %v1239_v51 = vpop.permute.xlu1 %1238  ;;  %2659 = vmatmul.mubr.msk.f32.vlgmr.msra.gmra.mrb[16].mxu0 %vm1343_vm10, %v4056_v17 }
 0x225   : > { %v1237_v41 = vpop.permute.xlu0 %1236 }
 0x228   : > { %v1177_v24 = vpop.permute.xlu1 %1176 }
 0x229   : > { %v1175_v48 = vpop.permute.xlu0 %1174  ;;  %v1302_v62 = vsel %vm1296_vm8, %v3926_v53, %v1177_v24  ;;  %v2467_v53 = vld [vmem:[%s4579_s20 + $0x28] sm:$0xf]  ;;  %v1108_v24 = vsel %vm1054_vm6, 0.0, %v1064_v61 }
 0x22a   : > { %v1301_v52 = vsel %vm1296_vm8, %v1107_v11, %v1175_v48  ;;  %v2788_v28 = vpack.c.bf16 %v2467_v53, %v2466_v45 }
 0x22c   : > { %v1247_v49 = vpop.permute.xlu1 %1246 }
 0x22d   : > { %v1245_v58 = vpop.permute.xlu0 %1244  ;;  %v4072_v63 = vsel %vm1317_vm9, %v1302_v62, %v1247_v49  ;;  %v1110_v62 = vsel %vm1054_vm6, 0.0, %v1070_v4 }
 0x22e   : > { %v4069_v23 = vsel %vm1317_vm9, %v1301_v52, %v1245_v58 }
 0x22f   : > { %2661 = vmatprep.mubr.msk.f32.mxu0 %vm1343_vm10, %v4069_v23 }
 0x230   : > { %2662 = vmatmul.mubr.msk.f32.gmra.mrb[18].mxu0 %vm1343_vm10, %v4072_v63  ;;  %v1263_v1 = vpop.permute.xlu1 %1262 }
 0x231   : > { %v1193_v56 = vpop.permute.xlu0 %1192 }
 0x232   : > { %v1310_v5 = vsel %vm1296_vm8, %v3944_v26, %v1193_v56 }
 0x233   : > { %v4094_v31 = vsel %vm1317_vm9, %v1310_v5, %v1263_v1 }
 0x234   : > { %v1261_v2 = vpop.permute.xlu1 %1260 }
 0x235   : > { %v1191_v8 = vpop.permute.xlu0 %1190 }
 0x236   : > { %v1309_v10 = vsel %vm1296_vm8, %v1111_v9, %v1191_v8 }
 0x237   : > { %v4091_v14 = vsel %vm1317_vm9, %v1309_v10, %v1261_v2  ;;  %v1930_v10 = vld [vmem:[%s4587_s17] sm:$0xf]  ;;  %s2514_s17 = sshll.u32 %s4576_s6, 4 }
 0x238   : > { %2673 = vmatprep.mubr.msk.f32.mxu1 %vm1343_vm10, %v4091_v14  ;;  %v1197_v36 = vpop.permute.xlu1 %1196  ;;  %2738 = vmatprep.subr.msk.mxu0 %vm1392_vm1, %v1930_v10  ;;  %s2235_s6 = sadd.s32 %s2514_s17, %s2509_s9 }
 0x239   : > { %2674 = vmatmul.mubr.msk.f32.vlgmr.msra.gmra.mrb[4].mxu1 %vm1343_vm10, %v4094_v31  ;;  %v1195_v26 = vpop.permute.xlu0 %1194  ;;  %v1312_v47 = vsel %vm1296_vm8, %v3953_v6, %v1197_v36  ;;  %2739 = vmatpush3.msk.msra.mxu0 %vm1392_vm1, %v1930_v10 }
 0x23a   : > { %2787 = vmatpush3.bf16.msk.msra.mxu1 %vm3731_vm3, %v3956_v20  ;;  %v1311_v19 = vsel %vm1296_vm8, %v1112_v13, %v1195_v26  ;;  %v1113_v20 = vsel %vm1054_vm6, 0.0, %v1079_v25  ;;  %v1318_v25 = vsel %vm1317_vm9, %v1297_v0, %v1237_v41 }
 0x23b   : > { %2790 = vmatprep.subr.msk.bf16.mxu1 %vm3731_vm3, %v2788_v28 }
 0x23c   : > { %v1267_v27 = vpop.permute.xlu1 %1266 }
 0x23d   : > { %v1265_v34 = vpop.permute.xlu0 %1264  ;;  %v4115_v21 = vsel %vm1317_vm9, %v1312_v47, %v1267_v27  ;;  %v4241_v47 = vld [vmem:[%s4588_s21] ss:$0 sm:$0xff]  ;;  %s2510_s21 = sshll.u32 %s2235_s6, 7 }
 0x23e   : > { %v4112_v12 = vsel %vm1317_vm9, %v1311_v19, %v1265_v34 }
 0x23f   : > { %2676 = vmatprep.mubr.msk.f32.mxu1 %vm1343_vm10, %v4112_v12 }
 0x240   : > { %2677 = vmatmul.mubr.msk.f32.gmra.mrb[6].mxu1 %vm1343_vm10, %v4115_v21  ;;  %v1201_v43 = vpop.permute.xlu1 %1200 }
 0x241   : > { %v1199_v42 = vpop.permute.xlu0 %1198  ;;  %v1314_v55 = vsel %vm1296_vm8, %v3984_v33, %v1201_v43  ;;  %v1298_v33 = vsel %vm1296_vm8, %v3914_v38, %v4042_v39  ;;  %v4246_v43 = vld [vmem:[%s4589_s8] ss:$0 sm:$0xff]  ;;  %s4593_s8 = sld [smem:[#allocation37_spill]] }
 0x242   : > { %v1313_v6 = vsel %vm1296_vm8, %v1113_v20, %v1199_v42  ;;  %v1319_v44 = vsel %vm1317_vm9, %v1298_v33, %v1239_v51 }
 0x244   : > { %v1271_v32 = vpop.permute.xlu1 %1270 }
 0x245   : > { %v1269_v50 = vpop.permute.xlu0 %1268  ;;  %v4136_v7 = vsel %vm1317_vm9, %v1314_v55, %v1271_v32 }
 0x246   : > { %v4131_v60 = vsel %vm1317_vm9, %v1313_v6, %v1269_v50 }
 0x247   : > { %2679 = vmatprep.mubr.msk.f32.mxu1 %vm1343_vm10, %v4131_v60  ;;  %s4394_s3 = scalar_lea.hbm %s4593_s8, %s2510_s21 }
 0x248   : > { %v1181_v59 = vpop.permute.xlu1 %1180  ;;  %2680 = vmatmul.mubr.msk.f32.gmra.mrb[8].mxu1 %vm1343_vm10, %v4136_v7 }
 0x249   : > { %v1179_v46 = vpop.permute.xlu0 %1178  ;;  %2686 = vmatprep.mubr.msk.f32.mxu1 %vm1343_vm10, %v1318_v25  ;;  %v1304_v38 = vsel %vm1296_vm8, %v3961_v22, %v1181_v59  ;;  %v1109_v22 = vsel %vm1054_vm6, 0.0, %v1067_v40 }
 0x24a   : > { %v1303_v41 = vsel %vm1296_vm8, %v1108_v24, %v1179_v46 }
 0x24c   : > { %v1251_v48 = vpop.permute.xlu1 %1250  ;;  %2687 = vmatmul.mubr.msk.f32.vlgmr.msra.gmra.mrb[10].mxu1 %vm1343_vm10, %v1319_v44 }
 0x24d   : > { %2793 = vmatpush3.bf16.msk.msra.mxu1 %vm3731_vm3, %v2788_v28  ;;  %v1249_v11 = vpop.permute.xlu0 %1248  ;;  %2689 = vmatprep.mubr.msk.f32.mxu1 %vm1343_vm10, %v4053_v15  ;;  %v1325_v16 = vsel %vm1317_vm9, %v1304_v38, %v1251_v48 }
 0x24e   : > { %v1324_v39 = vsel %vm1317_vm9, %v1303_v41, %v1249_v11 }
 0x24f   : > { %2664 = vmatprep.mubr.msk.f32.mxu0 %vm1343_vm10, %v1324_v39 }
 0x250   : > { %v1185_v61 = vpop.permute.xlu1 %1184  ;;  %2665 = vmatmul.mubr.msk.f32.gmra.mrb[20].mxu0 %vm1343_vm10, %v1325_v16  ;;  %2690 = vmatmul.mubr.msk.f32.gmra.mrb[12].mxu1 %vm1343_vm10, %v4056_v17 }
 0x251   : > { %v1183_v30 = vpop.permute.xlu0 %1182  ;;  %2692 = vmatprep.mubr.msk.f32.mxu1 %vm1343_vm10, %v4069_v23  ;;  %v1306_v17 = vsel %vm1296_vm8, %v3970_v29, %v1185_v61 }
 0x252   : > { %v1305_v51 = vsel %vm1296_vm8, %v1109_v22, %v1183_v30 }
 0x254   : > { %v1255_v15 = vpop.permute.xlu1 %1254  ;;  %2693 = vmatmul.mubr.msk.f32.gmra.mrb[14].mxu1 %vm1343_vm10, %v4072_v63 }
 0x255   : > { %v1253_v49 = vpop.permute.xlu0 %1252  ;;  %2695 = vmatprep.mubr.msk.f32.mxu1 %vm1343_vm10, %v1324_v39  ;;  %v1327_v58 = vsel %vm1317_vm9, %v1306_v17, %v1255_v15 }
 0x256   : > { %v1326_v52 = vsel %vm1317_vm9, %v1305_v51, %v1253_v49 }
 0x257   : > { %2667 = vmatprep.mubr.msk.f32.mxu0 %vm1343_vm10, %v1326_v52 }
 0x258   : > { %v1189_v37 = vpop.permute.xlu1 %1188  ;;  %2668 = vmatmul.mubr.msk.f32.gmra.mrb[22].mxu0 %vm1343_vm10, %v1327_v58  ;;  %2696 = vmatmul.mubr.msk.f32.gmra.mrb[16].mxu1 %vm1343_vm10, %v1325_v16 }
 0x259   : > { %v1187_v40 = vpop.permute.xlu0 %1186  ;;  %2698 = vmatprep.mubr.msk.f32.mxu1 %vm1343_vm10, %v1326_v52  ;;  %v1308_v2 = vsel %vm1296_vm8, %v3978_v3, %v1189_v37 }
 0x25a   : > { %v1307_v29 = vsel %vm1296_vm8, %v1110_v62, %v1187_v40 }
 0x25c   : > { %v1259_v1 = vpop.permute.xlu1 %1258  ;;  %2699 = vmatmul.mubr.msk.f32.gmra.mrb[18].mxu1 %vm1343_vm10, %v1327_v58 }
 0x25d   : > { %v1257_v56 = vpop.permute.xlu0 %1256  ;;  %v1329_v53 = vsel %vm1317_vm9, %v1308_v2, %v1259_v1 }
 0x25e   : > { %v1328_v45 = vsel %vm1317_vm9, %v1307_v29, %v1257_v56 }
 0x25f   : > { %2670 = vmatprep.mubr.msk.f32.mxu0 %vm1343_vm10, %v1328_v45  ;;  %2701 = vmatprep.mubr.msk.f32.mxu1 %vm1343_vm10, %v1328_v45 }
 0x260   : > { %2671 = vmatmul.mubr.msk.f32.gmra.mrb[24].mxu0 %vm1343_vm10, %v1329_v53  ;;  %2702 = vmatmul.mubr.msk.f32.gmra.mrb[4].mxu1 %vm1343_vm10, %v1329_v53  ;;  %v1205_v4 = vpop.permute.xlu1 %1204 }
 0x261   : > { %2704 = vmatprep.mubr.msk.f32.mxu1 %vm1343_vm10, %v4091_v14  ;;  %v1203_v57 = vpop.permute.xlu0 %1202  ;;  %v1316_v8 = vsel %vm1296_vm8, %v3987_v35, %v1205_v4 }
 0x264   : > { %2705 = vmatmul.mubr.msk.f32.gmra.mrb[6].mxu1 %vm1343_vm10, %v4094_v31 }
 0x265   : > { %2707 = vmatprep.mubr.msk.f32.mxu1 %vm1343_vm10, %v4112_v12  ;;  %v1273_v3 = vpop.permute.xlu0 %1272 }
 0x268   : > { %2708 = vmatmul.mubr.msk.f32.gmra.mrb[8].mxu1 %vm1343_vm10, %v4115_v21 }
 0x269   : > { %2714 = vmatprep.mubr.msk.f32.mxu1 %vm1343_vm10, %v4069_v23  ;;  %v1315_v23 = vsel %vm1296_vm8, %v3991_v18, %v1203_v57 }
 0x26a   : > { %v1336_v5 = vsel %vm1317_vm9, %v1315_v23, %v1273_v3 }
 0x26c   : > { %2715 = vmatmul.mubr.msk.f32.vlgmr.msra.gmra.mrb[10].mxu1 %vm1343_vm10, %v4072_v63  ;;  %v1275_v63 = vpop.permute.xlu1 %1274 }
 0x26d   : > { %2717 = vmatprep.mubr.msk.f32.mxu1 %vm1343_vm10, %v1324_v39  ;;  %v1337_v9 = vsel %vm1317_vm9, %v1316_v8, %v1275_v63 }
 0x270   : > { %2718 = vmatmul.mubr.msk.f32.gmra.mrb[12].mxu1 %vm1343_vm10, %v1325_v16 }
 0x271   : > { %2720 = vmatprep.mubr.msk.f32.mxu1 %vm1343_vm10, %v1326_v52 }
 0x274   : > { %2721 = vmatmul.mubr.msk.f32.gmra.mrb[14].mxu1 %vm1343_vm10, %v1327_v58 }
 0x275   : > { %2723 = vmatprep.mubr.msk.f32.mxu1 %vm1343_vm10, %v1328_v45 }
 0x278   : > { %2724 = vmatmul.mubr.msk.f32.gmra.mrb[16].mxu1 %vm1343_vm10, %v1329_v53 }
 0x279   : > { %2726 = vmatprep.mubr.msk.f32.mxu1 %vm1343_vm10, %v4091_v14 }
 0x27c   : > { %2727 = vmatmul.mubr.msk.f32.gmra.mrb[18].mxu1 %vm1343_vm10, %v4094_v31 }
 0x27d   : > { %2729 = vmatprep.mubr.msk.f32.mxu1 %vm1343_vm10, %v4112_v12 }
 0x280   : > { %2730 = vmatmul.mubr.msk.f32.gmra.mrb[4].mxu1 %vm1343_vm10, %v4115_v21 }
 0x281   : > { %2732 = vmatprep.mubr.msk.f32.mxu1 %vm1343_vm10, %v4131_v60 }
 0x284   : > { %2733 = vmatmul.mubr.msk.f32.gmra.mrb[6].mxu1 %vm1343_vm10, %v4136_v7 }
 0x285   : > { %2735 = vmatprep.mubr.msk.f32.mxu1 %vm1343_vm10, %v1336_v5 }
 0x288   : > { %2736 = vmatmul.mubr.msk.f32.gmra.mrb[8].mxu1 %vm1343_vm10, %v1337_v9 }
 0x2f7   : > { %v2660_v18 = vpop.f32.mrb[16].mxu0 }
 0x2f8   : > { %v1462_v14 = vpop.f32.mrb[17].mxu0 }
 0x303   : > { %v2663_v28 = vpop.f32.mrb[18].mxu0 }
 0x304   : > { %v1472_v31 = vpop.f32.mrb[19].mxu0 }
 0x323   : > { %v2666_v36 = vpop.f32.mrb[20].mxu0 }
 0x324   : > { %v1482_v26 = vpop.f32.mrb[21].mxu0 }
 0x32b   : > { %v2669_v13 = vpop.f32.mrb[22].mxu0 }
 0x32c   : > { %v1492_v35 = vpop.f32.mrb[23].mxu0 }
 0x333   : > { %v2672_v27 = vpop.f32.mrb[24].mxu0 }
 0x334   : > { %v1502_v19 = vpop.f32.mrb[25].mxu0 }
 0x33f   : > { %v2716_v34 = vpop.f32.mrb[10].mxu1 }
 0x340   : > { %v2796_v12 = vadd.f32 %v2716_v34, %v2660_v18  ;;  %v1773_v21 = vpop.f32.mrb[11].mxu1 }
 0x341   : > { %v2797_v42 = vadd.f32 %v1773_v21, %v1462_v14 }
 0x342   : > { %v1876_v20 = vmul.f32 %v2796_v12, %v4241_v47 }
 0x343   : > { %v1875_v32 = vmul.f32 %v2797_v42, %v4241_v47  ;;  %v2719_v6 = vpop.f32.mrb[12].mxu1 }
 0x344   : > { %v1899_v50 = vadd.f32 %v4246_v43, %v1876_v20  ;;  %v2798_v54 = vadd.f32 %v2719_v6, %v2663_v28  ;;  %v1783_v55 = vpop.f32.mrb[13].mxu1 }
 0x345   : > { %v1898_v60 = vadd.f32 %v4246_v43, %v1875_v32  ;;  %v2799_v0 = vadd.f32 %v1783_v55, %v1472_v31 }
 0x346   : > { %v1878_v7 = vmul.f32 %v2798_v54, %v4241_v47  ;;  %v1915_v33 = vmax.f32 %v1899_v50, 0.0 }
 0x347   : > { %v1914_v25 = vmax.f32 %v1898_v60, 0.0  ;;  %v1877_v59 = vmul.f32 %v2799_v0, %v4241_v47  ;;  %v2722_v46 = vpop.f32.mrb[14].mxu1 }
 0x348   : > { %v1901_v44 = vadd.f32 %v4246_v43, %v1878_v7  ;;  %v2800_v24 = vadd.f32 %v2722_v46, %v2666_v36  ;;  %v1793_v48 = vpop.f32.mrb[15].mxu1 }
 0x349   : > { %v1900_v41 = vadd.f32 %v4246_v43, %v1877_v59  ;;  %v2801_v11 = vadd.f32 %v1793_v48, %v1482_v26  ;;  %2740 = vmatprep.mubr.msk.f32.mxu0 %vm1296_vm8, %v1914_v25  ;;  %v4304_v25 = vld [vmem:[%s4591_s13] ss:$0 sm:$0xff]  ;;  %v2970_v48 = vld [vmem:[%s3654_s19 + $0x8] sm:$0xff] }
 0x34a   : > { %v1880_v38 = vmul.f32 %v2800_v24, %v4241_v47  ;;  %2741 = vmatmul.mubr.msk.f32.vlgmr.msra.gmra.mrb[26].mxu0 %vm1296_vm8, %v1915_v33  ;;  %v1917_v30 = vmax.f32 %v1901_v44, 0.0 }
 0x34b   : > { %v1916_v39 = vmax.f32 %v1900_v41, 0.0  ;;  %v1879_v16 = vmul.f32 %v2801_v11, %v4241_v47  ;;  %v2725_v61 = vpop.f32.mrb[16].mxu1 }
 0x34c   : > { %v1903_v22 = vadd.f32 %v4246_v43, %v1880_v38  ;;  %v2802_v15 = vadd.f32 %v2725_v61, %v2669_v13  ;;  %v1803_v51 = vpop.f32.mrb[17].mxu1 }
 0x34d   : > { %v1902_v49 = vadd.f32 %v4246_v43, %v1879_v16  ;;  %v2803_v17 = vadd.f32 %v1803_v51, %v1492_v35  ;;  %2743 = vmatprep.mubr.msk.f32.mxu0 %vm1296_vm8, %v1916_v39  ;;  %v2971_v39 = vld [vmem:[%s3654_s19] sm:$0xff] }
 0x34e   : > { %v1882_v52 = vmul.f32 %v2802_v15, %v4241_v47  ;;  %2744 = vmatmul.mubr.msk.f32.gmra.mrb[28].mxu0 %vm1296_vm8, %v1917_v30  ;;  %v1919_v62 = vmax.f32 %v1903_v22, 0.0 }
 0x34f   : > { %v1918_v58 = vmax.f32 %v1902_v49, 0.0  ;;  %v1881_v37 = vmul.f32 %v2803_v17, %v4241_v47  ;;  %v2728_v40 = vpop.f32.mrb[18].mxu1  ;;  %v2972_v17 = vld [vmem:[%s3654_s19 + $0x18] sm:$0xff] }
 0x350   : > { %v1905_v1 = vadd.f32 %v4246_v43, %v1882_v52  ;;  %v2804_v29 = vadd.f32 %v2728_v40, %v2672_v27  ;;  %v1813_v56 = vpop.f32.mrb[19].mxu1  ;;  %v2973_v40 = vld [vmem:[%s3654_s19 + $0x10] sm:$0xff] }
 0x351   : > { %v1904_v2 = vadd.f32 %v4246_v43, %v1881_v37  ;;  %v2805_v45 = vadd.f32 %v1813_v56, %v1502_v19  ;;  %2746 = vmatprep.mubr.msk.f32.mxu0 %vm1296_vm8, %v1918_v58 }
 0x352   : > { %v1884_v53 = vmul.f32 %v2804_v29, %v4241_v47  ;;  %2747 = vmatmul.mubr.msk.f32.gmra.mrb[30].mxu0 %vm1296_vm8, %v1919_v62  ;;  %v1921_v23 = vmax.f32 %v1905_v1, 0.0 }
 0x353   : > { %v1920_v57 = vmax.f32 %v1904_v2, 0.0  ;;  %v1883_v4 = vmul.f32 %v2805_v45, %v4241_v47  ;;  %v2731_v3 = vpop.f32.mrb[4].mxu1 }
 0x354   : > { %v1907_v63 = vadd.f32 %v4246_v43, %v1884_v53  ;;  %v1886_v5 = vmul.f32 %v2731_v3, %v4241_v47  ;;  %v1823_v8 = vpop.f32.mrb[5].mxu1 }
 0x355   : > { %v1906_v9 = vadd.f32 %v4246_v43, %v1883_v4  ;;  %v1885_v10 = vmul.f32 %v4241_v47, %v1823_v8  ;;  %2749 = vmatprep.mubr.msk.f32.mxu0 %vm1296_vm8, %v1920_v57  ;;  %v2974_v57 = vld [vmem:[%s3654_s19 + $0x28] sm:$0xff] }
 0x356   : > { %2750 = vmatmul.mubr.msk.f32.gmra.mrb[32].mxu0 %vm1296_vm8, %v1921_v23  ;;  %v1923_v31 = vmax.f32 %v1907_v63, 0.0  ;;  %v1909_v36 = vadd.f32 %v4246_v43, %v1886_v5  ;;  %v2975_v63 = vld [vmem:[%s3654_s19 + $0x20] sm:$0xff] }
 0x357   : > { %v1922_v18 = vmax.f32 %v1906_v9, 0.0  ;;  %v1908_v14 = vadd.f32 %v4246_v43, %v1885_v10  ;;  %v2734_v28 = vpop.f32.mrb[6].mxu1 }
 0x358   : > { %v1888_v26 = vmul.f32 %v2734_v28, %v4241_v47  ;;  %v1833_v13 = vpop.f32.mrb[7].mxu1  ;;  %v1925_v12 = vmax.f32 %v1909_v36, 0.0 }
 0x359   : > { %v1924_v35 = vmax.f32 %v1908_v14, 0.0  ;;  %v1887_v27 = vmul.f32 %v4241_v47, %v1833_v13  ;;  %2752 = vmatprep.mubr.msk.f32.mxu0 %vm1296_vm8, %v1922_v18 }
 0x35a   : > { %2753 = vmatmul.mubr.msk.f32.gmra.mrb[34].mxu0 %vm1296_vm8, %v1923_v31  ;;  %v1911_v21 = vadd.f32 %v4246_v43, %v1888_v26  ;;  %v2976_v31 = vld [vmem:[%s3654_s19 + $0x38] sm:$0xff] }
 0x35b   : > { %v1910_v19 = vadd.f32 %v4246_v43, %v1887_v27  ;;  %v2737_v34 = vpop.f32.mrb[8].mxu1  ;;  %2755 = vmatprep.mubr.msk.f32.mxu0 %vm1296_vm8, %v1924_v35  ;;  %v2977_v35 = vld [vmem:[%s3654_s19 + $0x30] sm:$0xff] }
 0x35c   : > { %v1890_v42 = vmul.f32 %v2737_v34, %v4241_v47  ;;  %v1843_v20 = vpop.f32.mrb[9].mxu1  ;;  %v1927_v54 = vmax.f32 %v1911_v21, 0.0 }
 0x35d   : > { %v1926_v32 = vmax.f32 %v1910_v19, 0.0  ;;  %v1889_v6 = vmul.f32 %v4241_v47, %v1843_v20  ;;  %v4299_v47 = vld [vmem:[%s4590_s11] ss:$0 sm:$0xff]  ;;  %s3076_s11 = scalar_lea.vmem %s4389_s15, 2048 }
 0x35e   : > { %2756 = vmatmul.mubr.msk.f32.gmra.mrb[36].mxu0 %vm1296_vm8, %v1925_v12  ;;  %v1913_v55 = vadd.f32 %v4246_v43, %v1890_v42  ;;  %p3077_p7 = scmp.ne.s32.totalorder %s4389_s15, %s3076_s11 }
 0x35f   : > { %v1912_v50 = vadd.f32 %v4246_v43, %v1889_v6  ;;  %2758 = vmatprep.mubr.msk.f32.mxu0 %vm1296_vm8, %v1926_v32  ;;  %v2978_v32 = vld [vmem:[%s3654_s19 + $0x48] sm:$0xff] }
 0x360   : > { %v1929_v0 = vmax.f32 %v1913_v55, 0.0  ;;  %v2979_v55 = vld [vmem:[%s3654_s19 + $0x40] sm:$0xff]  ;;  %p3078_p4 = pnand %p3077_p7, %p4594_p6 }
 0x361   : > { %v1928_v60 = vmax.f32 %v1912_v50, 0.0 }
 0x362   : > { %2759 = vmatmul.mubr.msk.f32.gmra.mrb[38].mxu0 %vm1296_vm8, %v1927_v54  ;;  %p3079_p0 = pneg %p3078_p4 }
 0x363   : > { %2761 = vmatprep.mubr.msk.f32.mxu0 %vm1296_vm8, %v1928_v60 }
 0x366   : > { %2762 = vmatmul.mubr.msk.f32.gmra.mrb[40].mxu0 %vm1296_vm8, %v1929_v0 }
 0x41d   : > { %v2742_v7 = vpop.f32.mrb[26].mxu0 }
 0x41e   : > { %v2135_v43 = vmul.f32 %v2742_v7, %v4299_v47  ;;  %v2048_v59 = vpop.f32.mrb[27].mxu0 }
 0x41f   : > { %v2134_v46 = vmul.f32 %v4299_v47, %v2048_v59 }
 0x420   : > { %v2158_v33 = vadd.f32 %v4304_v25, %v2135_v43 }
 0x421   : > { %v2157_v44 = vadd.f32 %v4304_v25, %v2134_v46  ;;  %v2745_v24 = vpop.f32.mrb[28].mxu0 }
 0x422   : > { %v2174_v41 = vadd.f32 %v2970_v48, %v2158_v33  ;;  %v2137_v11 = vmul.f32 %v2745_v24, %v4299_v47  ;;  %v2058_v38 = vpop.f32.mrb[29].mxu0 }
 0x423   : > { %v2173_v16 = vadd.f32 %v2971_v39, %v2157_v44  ;;  %v2136_v61 = vmul.f32 %v4299_v47, %v2058_v38  ;;  %v2980_v44 = vld [vmem:[%s3654_s19 + $0x58] sm:$0xff] }
 0x424   : > { %v2190_v30 = vmax.f32 %v2174_v41, 0.0  ;;  %v2160_v22 = vadd.f32 %v4304_v25, %v2137_v11  ;;  %v2981_v11 = vld [vmem:[%s3654_s19 + $0x50] sm:$0xff] }
 0x425   : > { %v2189_v15 = vmax.f32 %v2173_v16, 0.0  ;;  %v2159_v51 = vadd.f32 %v4304_v25, %v2136_v61  ;;  %v2748_v49 = vpop.f32.mrb[30].mxu0 }
 0x426   : > { %2206 = vst.msk [vmem:[%s4318_s24 + $0x8] sm:$0xff] %vm590_vm0, %v2190_v30  ;;  %v2176_v52 = vadd.f32 %v2972_v17, %v2160_v22  ;;  %v2139_v58 = vmul.f32 %v2748_v49, %v4299_v47  ;;  %v2068_v37 = vpop.f32.mrb[31].mxu0 }
 0x427   : > { %2205 = vst.msk [vmem:[%s4318_s24] sm:$0xff] %vm590_vm0, %v2189_v15  ;;  %v2175_v62 = vadd.f32 %v2973_v40, %v2159_v51  ;;  %v2138_v1 = vmul.f32 %v4299_v47, %v2068_v37  ;;  %v2982_v51 = vld [vmem:[%s3654_s19 + $0x68] sm:$0xff] }
 0x428   : > { %v2192_v29 = vmax.f32 %v2176_v52, 0.0  ;;  %v2162_v56 = vadd.f32 %v4304_v25, %v2139_v58  ;;  %v2983_v58 = vld [vmem:[%s3654_s19 + $0x60] sm:$0xff] }
 0x429   : > { %v2191_v2 = vmax.f32 %v2175_v62, 0.0  ;;  %v2161_v45 = vadd.f32 %v4304_v25, %v2138_v1  ;;  %v2751_v53 = vpop.f32.mrb[32].mxu0 }
 0x42a   : > { %2208 = vst.msk [vmem:[%s4318_s24 + $0x18] sm:$0xff] %vm590_vm0, %v2192_v29  ;;  %v2178_v4 = vadd.f32 %v2974_v57, %v2162_v56  ;;  %v2141_v3 = vmul.f32 %v2751_v53, %v4299_v47  ;;  %v2078_v23 = vpop.f32.mrb[33].mxu0 }
 0x42b   : > { %2207 = vst.msk [vmem:[%s4318_s24 + $0x10] sm:$0xff] %vm590_vm0, %v2191_v2  ;;  %v2177_v5 = vadd.f32 %v2975_v63, %v2161_v45  ;;  %v2140_v8 = vmul.f32 %v4299_v47, %v2078_v23  ;;  %v2984_v2 = vld [vmem:[%s3654_s19 + $0x78] sm:$0xff] }
 0x42c   : > { %v2194_v9 = vmax.f32 %v2178_v4, 0.0  ;;  %v2164_v10 = vadd.f32 %v4304_v25, %v2141_v3 }
 0x42d   : > { %v2193_v18 = vmax.f32 %v2177_v5, 0.0  ;;  %v2163_v14 = vadd.f32 %v4304_v25, %v2140_v8  ;;  %v2754_v28 = vpop.f32.mrb[34].mxu0 }
 0x42e   : > { %2210 = vst.msk [vmem:[%s4318_s24 + $0x28] sm:$0xff] %vm590_vm0, %v2194_v9  ;;  %v2180_v36 = vadd.f32 %v2976_v31, %v2164_v10  ;;  %v2143_v26 = vmul.f32 %v2754_v28, %v4299_v47  ;;  %v2088_v13 = vpop.f32.mrb[35].mxu0 }
 0x42f   : > { %2209 = vst.msk [vmem:[%s4318_s24 + $0x20] sm:$0xff] %vm590_vm0, %v2193_v18  ;;  %v2179_v27 = vadd.f32 %v2977_v35, %v2163_v14  ;;  %v2142_v19 = vmul.f32 %v4299_v47, %v2088_v13 }
 0x430   : > { %v2196_v34 = vmax.f32 %v2180_v36, 0.0  ;;  %v2166_v12 = vadd.f32 %v4304_v25, %v2143_v26 }
 0x431   : > { %v2195_v21 = vmax.f32 %v2179_v27, 0.0  ;;  %v2165_v42 = vadd.f32 %v4304_v25, %v2142_v19  ;;  %v2757_v20 = vpop.f32.mrb[36].mxu0 }
 0x432   : > { %2212 = vst.msk [vmem:[%s4318_s24 + $0x38] sm:$0xff] %vm590_vm0, %v2196_v34  ;;  %v2182_v6 = vadd.f32 %v2978_v32, %v2166_v12  ;;  %v2145_v50 = vmul.f32 %v2757_v20, %v4299_v47  ;;  %v2098_v54 = vpop.f32.mrb[37].mxu0 }
 0x433   : > { %2211 = vst.msk [vmem:[%s4318_s24 + $0x30] sm:$0xff] %vm590_vm0, %v2195_v21  ;;  %v2181_v60 = vadd.f32 %v2979_v55, %v2165_v42  ;;  %v2144_v0 = vmul.f32 %v4299_v47, %v2098_v54 }
 0x434   : > { %v2198_v7 = vmax.f32 %v2182_v6, 0.0  ;;  %v2168_v43 = vadd.f32 %v4304_v25, %v2145_v50 }
 0x435   : > { %v2197_v59 = vmax.f32 %v2181_v60, 0.0  ;;  %v2167_v46 = vadd.f32 %v4304_v25, %v2144_v0  ;;  %v2760_v33 = vpop.f32.mrb[38].mxu0 }
 0x436   : > { %2214 = vst.msk [vmem:[%s4318_s24 + $0x48] sm:$0xff] %vm590_vm0, %v2198_v7  ;;  %v2184_v24 = vadd.f32 %v2980_v44, %v2168_v43  ;;  %v2147_v48 = vmul.f32 %v2760_v33, %v4299_v47  ;;  %v2108_v41 = vpop.f32.mrb[39].mxu0 }
 0x437   : > { %2213 = vst.msk [vmem:[%s4318_s24 + $0x40] sm:$0xff] %vm590_vm0, %v2197_v59  ;;  %v2183_v38 = vadd.f32 %v2981_v11, %v2167_v46  ;;  %v2146_v39 = vmul.f32 %v4299_v47, %v2108_v41 }
 0x438   : > { %v2200_v16 = vmax.f32 %v2184_v24, 0.0  ;;  %v2170_v61 = vadd.f32 %v4304_v25, %v2147_v48 }
 0x439   : > { %v2199_v30 = vmax.f32 %v2183_v38, 0.0  ;;  %v2169_v22 = vadd.f32 %v4304_v25, %v2146_v39  ;;  %v2763_v15 = vpop.f32.mrb[40].mxu0 }
 0x43a   : > { %2216 = vst.msk [vmem:[%s4318_s24 + $0x58] sm:$0xff] %vm590_vm0, %v2200_v16  ;;  %v2186_v49 = vadd.f32 %v2982_v51, %v2170_v61  ;;  %v2149_v17 = vmul.f32 %v2763_v15, %v4299_v47  ;;  %v2118_v52 = vpop.f32.mrb[41].mxu0 }
 0x43b   : > { %2215 = vst.msk [vmem:[%s4318_s24 + $0x50] sm:$0xff] %vm590_vm0, %v2199_v30  ;;  %v2185_v37 = vadd.f32 %v2983_v58, %v2169_v22  ;;  %v2148_v40 = vmul.f32 %v4299_v47, %v2118_v52  ;;  %v2985_v47 = vld [vmem:[%s3654_s19 + $0x70] sm:$0xff]  ;;  %s3240_s19 = smov [#allocation8]  }
 0x43c   : > { %v2202_v62 = vmax.f32 %v2186_v49, 0.0  ;;  %v2172_v1 = vadd.f32 %v4304_v25, %v2149_v17  ;;  %s3080_s25 = sshll.u32 %s3240_s19, 4  ;;  %s3081_s25 = int_to_ptr.vmem [resolvable:$false] %s3080_s25 }
 0x43d   : > { %v2201_v29 = vmax.f32 %v2185_v37, 0.0  ;;  %v2171_v56 = vadd.f32 %v4304_v25, %v2148_v40  ;;  %s3082_s4 = scalar_lea.vmem %s3081_s25, 4096  ;;  %p3083_p12 = scmp.lt.s32.totalorder %s4389_s15, %s3081_s25 }
 0x43e   : > { %2218 = vst.msk [vmem:[%s4318_s24 + $0x68] sm:$0xff] %vm590_vm0, %v2202_v62  ;;  %v2188_v45 = vadd.f32 %v2984_v2, %v2172_v1  ;;  %p3084_p11 = scmp.lt.s32.totalorder %s3082_s4, %s3076_s11 }
 0x43f   : > { %2217 = vst.msk [vmem:[%s4318_s24 + $0x60] sm:$0xff] %vm590_vm0, %v2201_v29  ;;  %v2187_v53 = vadd.f32 %v2985_v47, %v2171_v56 }
 0x440   : > { %v2204_v57 = vmax.f32 %v2188_v45, 0.0  ;;  %p3085_p2 = por %p3084_p11, %p3083_p12 }
 0x441   : > { %v2203_v4 = vmax.f32 %v2187_v53, 0.0 }
 0x442   : > { %2220 = vst.msk [vmem:[%s4318_s24 + $0x78] sm:$0xff] %vm590_vm0, %v2204_v57  ;;  %p3086_p1 = pnand %p3085_p2, %p3079_p0 }
 0x443   : > { %2219 = vst.msk [vmem:[%s4318_s24 + $0x70] sm:$0xff] %vm590_vm0, %v2203_v4 }
 0x444   : > { %3089 = shalt.err (!%p3086_p1)
}
 0x445   : > { %s3090_s13 = scalar_lea.hbm %s4394_s3, 2048  ;;  %s3094_s17 = scalar_lea.hbm %s4593_s8, 8192 }
 0x446   : > { %p3091_p5 = scmp.ne.s32.totalorder %s4394_s3, %s3090_s13  ;;  %p3095_p10 = scmp.lt.u32.totalorder %s4394_s3, %s4593_s8 }
 0x447   : > { %p3096_p3 = scmp.lt.u32.totalorder %s3094_s17, %s3090_s13  ;;  %p3098_p7 = scmp.lt.u32.totalorder %s3090_s13, %s4394_s3 }
 0x448   : > { %p3092_p8 = pnand %p3091_p5, %p4594_p6 }
 0x449   : > { %p3097_p9 = por %p3096_p3, %p3095_p10 }
 0x44a   : > { %p3093_p13 = pneg %p3092_p8 }
 0x44b   : > { %p3099_p4 = por %p3098_p7, %p3097_p9 }
 0x44d   : > { %p3100_p0 = pnand %p3099_p4, %p3093_p13 }
 0x44f   : > { %3103 = shalt.err (!%p3100_p0)
}
 0x450   : > { %s3241_s21 = smov 128  }
 0x451   : > { %2834 = dma.vmem_to_hbm [thread:$0]  (%p4594_p6), %s4389_s15, 2048, %s4394_s3, %s2222_s10, %s3241_s21, %s3241_s21, %s3239_s30  }
 0x452 PF: > { %p2851_p12 = scmp.ge.s32.totalorder %s3230_s16, 2  ;;  %s2253_s14 = sand.u32 1, %s3202_s27  }
 0x453   : > { %p4595_p11 = scmp.ne.s32.totalorder %s4553_s18, 0  ;;  %s2254_s29 = scalar_lea.sflag [#allocation4], %s2253_s14 }
 0x455   : > { %p2847_p2 = pnand %p2851_p12, %p4595_p11 }
 0x457   : > { %3173 = dma.done.wait (!%p2847_p2), %s2254_s29, 2048  }
 0x458   : > { %3175 = vsyncadd (!%p2847_p2), %s2254_s29, 4294965248  ;;  %s31_s16 = sadd.s32 1, %s3230_s16   ;;  %s4597_s24 = sld [smem:[#allocation13_spill]] }
 0x459   : > { %p4430_p1 = scmp.ge.s32.totalorder %s31_s16, 6   ;;  %s4598_s5 = sld [smem:[#allocation23_spill]] }
 0x45a   : > { %s4599_s30 = sld [smem:[#allocation14_spill]]  ;;  %s4600_s29 = sld [smem:[#allocation24_spill]] }
 0x45b   : > { %s4601_s18 = sld [smem:[#allocation17_spill]]  ;;  %s4602_s13 = sld [smem:[#allocation18_spill]] }
 0x45c   : > { %s4603_s14 = sld [smem:[#allocation19_spill]]  ;;  %s4604_s15 = sld [smem:[#allocation20_spill]] }
 0x45d   : > { %s4605_s21 = smov %s3182_s22  ;;  %s4606_s22 = smov %s3186_s23 }
 0x45e   : > { %s4607_s23 = smov %s3598_s1  ;;  %s4608_s25 = smov %s3198_s26 }
 0x45f   : > { %s4609_s26 = smov %s4598_s5  ;;  %s4610_s27 = smov %s3206_s28 }
 0x460   : > { %s4611_s28 = smov %s4599_s30  ;;  %30 = sbr.rel (!%p4430_p1) target bundleno = 26 (0x1a), region = 139 }
 0x461   : > { %s4612_s30 = smov %s4601_s18 }
 0x467   :  { %2259 = vsyncpa [#allocation3], 1 }
 0x468   :  { %2261 = vsyncpa [#allocation3 + $0x1], 1 }
 0x469   :  { %2262 = vsyncpa [#allocation6], 1 }
 0x46a   :  { %2264 = vsyncpa [#allocation6 + $0x1], 1 }
 0x46b   :  { %2265 = vsyncpa [#allocation4], 1 }
 0x46c   :  { %2267 = vsyncpa [#allocation4 + $0x1], 1 }

</bundles_post_ra>
